<compile_context>
chip_gen: v7x
topology: tpu7x:2x2x1
jax: 0.10.0
libtpu: 0.0.40
codegen_flags: <defaults>
</compile_context>

<pallas_src>
import functools

import jax
import jax.numpy as jnp
from jax.experimental import pallas as pl
from jax.experimental.pallas import tpu as pltpu

MXU_DTYPE = jnp.bfloat16          # matmul operand dtype (f32 accumulation on MXU)
_VMEM_LIMIT = 32 * 1024 * 1024    # headroom above v5e's 16 MiB scoped default


def _pick_tile(n, max_tile):
    """Largest divisor of n that is <= max_tile (keeps the grid exact)."""
    t = max(1, min(n, max_tile))
    while n % t:
        t -= 1
    return t


# ---------------------------------------------------------------------------
# stride == 1 kernel
# ---------------------------------------------------------------------------
def _ir_kernel_s1(xt_ref, xm_ref, xb_ref, w1_ref, s1_ref, b1_ref, wdw_ref,
                  s2_ref, b2_ref, w3_ref, s3_ref, b3_ref, o_ref, dw_scr,
                  *, H, W, TH, expand, use_res):
    i = pl.program_id(1)
    R = TH + 2                                           # tile rows + 2 halo rows

    # ---- assemble the TH+2 input rows (halo rows fetched by separate specs) ----
    x_full = jnp.concatenate([xt_ref[0], xm_ref[0], xb_ref[0]], axis=0)  # (R,W,inp)

    # ---- 1x1 expand conv (MXU, bf16 operands, f32 accumulate) + BN + ReLU6 ----
    if expand:
        cin = x_full.shape[-1]
        hidden = w1_ref.shape[-1]
        h = jnp.dot(x_full.astype(MXU_DTYPE).reshape(R * W, cin), w1_ref[...],
                    preferred_element_type=jnp.float32)
        h = jnp.clip(h * s1_ref[...] + b1_ref[...], 0.0, 6.0).reshape(R, W, hidden)
    else:
        h = x_full.astype(jnp.float32)                   # hidden == inp

    # ---- zero the halo rows that fall on the image-border zero padding ----
    row = jax.lax.broadcasted_iota(jnp.int32, (R, 1, 1), 0) + (i * TH - 1)
    h = jnp.where((row >= 0) & (row < H), h, 0.0)

    # ---- depthwise 3x3, pad=1, stride=1 + BN + ReLU6 ----
    # Column taps via an 8-aligned scratch: one aligned store, two offset reads,
    # border columns masked in-register.  No padded plane, no zero-fill pass.
    dw_scr[:, 8:8 + W, :] = h
    col = jax.lax.broadcasted_iota(jnp.int32, (1, W, 1), 1)
    left = jnp.where(col >= 1, dw_scr[:, 7:7 + W, :], 0.0)        # h[:, c-1, :]
    right = jnp.where(col <= W - 2, dw_scr[:, 9:9 + W, :], 0.0)   # h[:, c+1, :]
    slabs = (left, h, right)                                       # kw = 0, 1, 2

    wk = wdw_ref[...]                                    # (9, 1, hidden), read once
    acc = None
    for kh in range(3):
        for kw in range(3):
            term = slabs[kw][kh:kh + TH] * wk[3 * kh + kw]
            acc = term if acc is None else acc + term
    acc = jnp.clip(acc * s2_ref[...] + b2_ref[...], 0.0, 6.0)      # (TH, W, hidden)

    # ---- 1x1 project conv (MXU) + BN (linear) ----
    hidden = acc.shape[-1]
    oup = w3_ref.shape[-1]
    y = jnp.dot(acc.astype(MXU_DTYPE).reshape(TH * W, hidden), w3_ref[...],
                preferred_element_type=jnp.float32)
    y = (y * s3_ref[...] + b3_ref[...]).reshape(TH, W, oup)

    if use_res:
        y = y + xm_ref[0].astype(jnp.float32)            # re-read the input tile here

    o_ref[0] = y.astype(o_ref.dtype)


def _forward_s1(x, *, w1b, s1r, b1r, wdw9, s2r, b2r, w3b, s3r, b3r,
                expand, use_res, tile_rows):
    N, H, W, inp = x.shape
    hidden = wdw9.shape[-1]
    oup = w3b.shape[-1]
    TH = _pick_tile(H, tile_rows)
    n_tiles = H // TH
    R = TH + 2

    kernel = functools.partial(_ir_kernel_s1, H=H, W=W, TH=TH,
                               expand=expand, use_res=use_res)

    const2 = lambda n, i: (0, 0)
    main = lambda n, i: (n, i, 0, 0)
    top = lambda n, i: (n, jnp.maximum(i * TH - 1, 0), 0, 0)
    bot = lambda n, i: (n, jnp.minimum((i + 1) * TH, H - 1), 0, 0)

    return pl.pallas_call(
        kernel,
        out_shape=jax.ShapeDtypeStruct((N, H, W, oup), x.dtype),
        grid_spec=pltpu.PrefetchScalarGridSpec(
            num_scalar_prefetch=0,
            grid=(N, n_tiles),
            in_specs=[
                pl.BlockSpec((1, 1, W, inp), top),        # halo row above
                pl.BlockSpec((1, TH, W, inp), main),      # main rows
                pl.BlockSpec((1, 1, W, inp), bot),        # halo row below
                pl.BlockSpec((inp, hidden), const2),      # w1 (bf16)
                pl.BlockSpec((1, hidden), const2),        # s1
                pl.BlockSpec((1, hidden), const2),        # b1
                pl.BlockSpec((9, 1, hidden), lambda n, i: (0, 0, 0)),  # dw weights
                pl.BlockSpec((1, hidden), const2),        # s2
                pl.BlockSpec((1, hidden), const2),        # b2
                pl.BlockSpec((hidden, oup), const2),      # w3 (bf16)
                pl.BlockSpec((1, oup), const2),           # s3
                pl.BlockSpec((1, oup), const2),           # b3
            ],
            out_specs=pl.BlockSpec((1, TH, W, oup), main),
            scratch_shapes=[pltpu.VMEM((R, W + 16, hidden), jnp.float32)],
        ),
        compiler_params=pltpu.CompilerParams(
            dimension_semantics=("parallel", "parallel"),
            vmem_limit_bytes=_VMEM_LIMIT),
    )(x, x, x, w1b, s1r, b1r, wdw9, s2r, b2r, w3b, s3r, b3r)


# ---------------------------------------------------------------------------
# stride == 2 kernel (input pre-split into row/col parity phases in the wrapper
# so every in-kernel access is unit-stride; no residual branch for stride 2)
# ---------------------------------------------------------------------------
def _ir_kernel_s2(xee_ref, xeo_ref, xoet_ref, xoe_ref, xoot_ref, xoo_ref,
                  w1_ref, s1_ref, b1_ref, wdw_ref, s2_ref, b2_ref,
                  w3_ref, s3_ref, b3_ref, o_ref, scr_eo, scr_oo,
                  *, Wo, TO, expand):
    i = pl.program_id(1)

    def expand_fn(xv):                                   # 1x1 expand per phase
        rows = xv.shape[0]
        if expand:
            cin = xv.shape[-1]
            hidden = w1_ref.shape[-1]
            hh = jnp.dot(xv.astype(MXU_DTYPE).reshape(rows * Wo, cin), w1_ref[...],
                         preferred_element_type=jnp.float32)
            hh = jnp.clip(hh * s1_ref[...] + b1_ref[...], 0.0, 6.0)
            return hh.reshape(rows, Wo, hidden)
        return xv.astype(jnp.float32)

    h_ee = expand_fn(xee_ref[0])                                        # (TO, Wo, C)
    h_eo = expand_fn(xeo_ref[0])                                        # (TO, Wo, C)
    h_oe = expand_fn(jnp.concatenate([xoet_ref[0], xoe_ref[0]], axis=0))  # (TO+1,..)
    h_oo = expand_fn(jnp.concatenate([xoot_ref[0], xoo_ref[0]], axis=0))  # (TO+1,..)

    # The odd-row halo is image zero-padding only for the first row tile.
    orow = jax.lax.broadcasted_iota(jnp.int32, (TO + 1, 1, 1), 0) + (i * TO - 1)
    h_oe = jnp.where(orow >= 0, h_oe, 0.0)
    h_oo = jnp.where(orow >= 0, h_oo, 0.0)

    # Column (c-1) taps of the odd-column phases via aligned scratch + mask.
    col = jax.lax.broadcasted_iota(jnp.int32, (1, Wo, 1), 1)
    scr_eo[:, 8:8 + Wo, :] = h_eo
    scr_oo[:, 8:8 + Wo, :] = h_oo
    h_eo_m = jnp.where(col >= 1, scr_eo[:, 7:7 + Wo, :], 0.0)   # h_eo[:, c-1, :]
    h_oo_m = jnp.where(col >= 1, scr_oo[:, 7:7 + Wo, :], 0.0)   # h_oo[:, c-1, :]

    wk = wdw_ref[...]                                    # (9, 1, hidden), read once
    # tap (kh,kw) -> weight index 3*kh+kw ; phase algebra: out(r,c) <- in(2r+kh-1,2c+kw-1)
    acc = h_ee * wk[4]                                   # (1,1)
    acc = acc + h_eo_m * wk[3]                           # (1,0)
    acc = acc + h_eo * wk[5]                             # (1,2)
    acc = acc + h_oe[0:TO] * wk[1]                       # (0,1)
    acc = acc + h_oe[1:TO + 1] * wk[7]                   # (2,1)
    acc = acc + h_oo_m[0:TO] * wk[0]                     # (0,0)
    acc = acc + h_oo[0:TO] * wk[2]                       # (0,2)
    acc = acc + h_oo_m[1:TO + 1] * wk[6]                 # (2,0)
    acc = acc + h_oo[1:TO + 1] * wk[8]                   # (2,2)
    acc = jnp.clip(acc * s2_ref[...] + b2_ref[...], 0.0, 6.0)    # (TO, Wo, hidden)

    hidden = acc.shape[-1]
    oup = w3_ref.shape[-1]
    y = jnp.dot(acc.astype(MXU_DTYPE).reshape(TO * Wo, hidden), w3_ref[...],
                preferred_element_type=jnp.float32)
    y = (y * s3_ref[...] + b3_ref[...]).reshape(TO, Wo, oup)
    o_ref[0] = y.astype(o_ref.dtype)                     # stride-2: no residual


def _forward_s2(x, *, w1b, s1r, b1r, wdw9, s2r, b2r, w3b, s3r, b3r,
                expand, tile_rows):
    N, H, W, inp = x.shape
    assert H % 2 == 0 and W % 2 == 0, "stride-2 path assumes even H, W"
    # TODO(synk): odd spatial sizes for stride=2 need an extra border phase.
    Ho, Wo = H // 2, W // 2
    hidden = wdw9.shape[-1]
    oup = w3b.shape[-1]
    TO = _pick_tile(Ho, tile_rows)
    n_tiles = Ho // TO

    # Parity phases (wrapper-side XLA) -> unit-stride taps inside the kernel.
    x_ee = x[:, 0::2, 0::2, :]
    x_eo = x[:, 0::2, 1::2, :]
    x_oe = x[:, 1::2, 0::2, :]
    x_oo = x[:, 1::2, 1::2, :]

    kernel = functools.partial(_ir_kernel_s2, Wo=Wo, TO=TO, expand=expand)

    const2 = lambda n, i: (0, 0)
    main = lambda n, i: (n, i, 0, 0)
    halo = lambda n, i: (n, jnp.maximum(i * TO - 1, 0), 0, 0)

    return pl.pallas_call(
        kernel,
        out_shape=jax.ShapeDtypeStruct((N, Ho, Wo, oup), x.dtype),
        grid_spec=pltpu.PrefetchScalarGridSpec(
            num_scalar_prefetch=0,
            grid=(N, n_tiles),
            in_specs=[
                pl.BlockSpec((1, TO, Wo, inp), main),     # even row / even col
                pl.BlockSpec((1, TO, Wo, inp), main),     # even row / odd col
                pl.BlockSpec((1, 1, Wo, inp), halo),      # odd row / even col (halo)
                pl.BlockSpec((1, TO, Wo, inp), main),     # odd row / even col
                pl.BlockSpec((1, 1, Wo, inp), halo),      # odd row / odd col (halo)
                pl.BlockSpec((1, TO, Wo, inp), main),     # odd row / odd col
                pl.BlockSpec((inp, hidden), const2),
                pl.BlockSpec((1, hidden), const2),
                pl.BlockSpec((1, hidden), const2),
                pl.BlockSpec((9, 1, hidden), lambda n, i: (0, 0, 0)),
                pl.BlockSpec((1, hidden), const2),
                pl.BlockSpec((1, hidden), const2),
                pl.BlockSpec((hidden, oup), const2),
                pl.BlockSpec((1, oup), const2),
                pl.BlockSpec((1, oup), const2),
            ],
            out_specs=pl.BlockSpec((1, TO, Wo, oup), main),
            scratch_shapes=[pltpu.VMEM((TO, Wo + 8, hidden), jnp.float32),
                            pltpu.VMEM((TO + 1, Wo + 8, hidden), jnp.float32)],
        ),
        compiler_params=pltpu.CompilerParams(
            dimension_semantics=("parallel", "parallel"),
            vmem_limit_bytes=_VMEM_LIMIT),
    )(x_ee, x_eo, x_oe, x_oe, x_oo, x_oo,
      w1b, s1r, b1r, wdw9, s2r, b2r, w3b, s3r, b3r)


# ---------------------------------------------------------------------------
# public wrapper (PyTorch-style NCHW in / NCHW out)
# ---------------------------------------------------------------------------
def inverted_residual_pallas(x_nchw, params, *, stride, expand_ratio, tile_rows=16):
    assert stride in (1, 2)
    w1, s1, b1, wdw, s2, b2, w3, s3, b3 = params
    N, inp, H, W = x_nchw.shape
    hidden, oup = w3.shape
    expand = expand_ratio != 1
    use_res = (stride == 1) and (inp == oup)

    if not expand:                       # dummy (unused) expand weights
        assert hidden == inp
        w1 = jnp.zeros((inp, hidden), jnp.float32)
        s1 = jnp.zeros((hidden,), jnp.float32)
        b1 = jnp.zeros((hidden,), jnp.float32)

    x = jnp.transpose(x_nchw, (0, 2, 3, 1))              # NCHW -> NHWC (C on lanes)

    args = dict(
        w1b=w1.astype(MXU_DTYPE),
        s1r=s1.reshape(1, hidden).astype(jnp.float32),
        b1r=b1.reshape(1, hidden).astype(jnp.float32),
        wdw9=wdw.reshape(9, 1, hidden).astype(jnp.float32),
        s2r=s2.reshape(1, hidden).astype(jnp.float32),
        b2r=b2.reshape(1, hidden).astype(jnp.float32),
        w3b=w3.astype(MXU_DTYPE),
        s3r=s3.reshape(1, oup).astype(jnp.float32),
        b3r=b3.reshape(1, oup).astype(jnp.float32),
    )
    if stride == 1:
        out = _forward_s1(x, expand=expand, use_res=use_res,
                          tile_rows=tile_rows, **args)
    else:
        out = _forward_s2(x, expand=expand, tile_rows=tile_rows, **args)
    return jnp.transpose(out, (0, 3, 1, 2))              # NHWC -> NCHW


# ---------------------------------------------------------------------------
# pure-JAX reference (inference-mode BN folded into scale/bias)
# ---------------------------------------------------------------------------
def inverted_residual_ref(x_nchw, params, *, stride, expand_ratio):
    w1, s1, b1, wdw, s2, b2, w3, s3, b3 = params
    inp = x_nchw.shape[1]
    hidden, oup = w3.shape
    dn = ('NHWC', 'HWIO', 'NHWC')
    P = jax.lax.Precision.HIGHEST
    x = jnp.transpose(x_nchw, (0, 2, 3, 1)).astype(jnp.float32)
    h = x
    if expand_ratio != 1:
        h = jax.lax.conv_general_dilated(h, w1.reshape(1, 1, inp, hidden), (1, 1),
                                         'VALID', dimension_numbers=dn, precision=P)
        h = jnp.clip(h * s1 + b1, 0.0, 6.0)
    h = jax.lax.conv_general_dilated(h, wdw.reshape(3, 3, 1, hidden),
                                     (stride, stride), [(1, 1), (1, 1)],
                                     dimension_numbers=dn,
                                     feature_group_count=hidden, precision=P)
    h = jnp.clip(h * s2 + b2, 0.0, 6.0)
    h = jax.lax.conv_general_dilated(h, w3.reshape(1, 1, hidden, oup), (1, 1),
                                     'VALID', dimension_numbers=dn, precision=P)
    h = h * s3 + b3
    if stride == 1 and inp == oup:
        h = h + x
    return jnp.transpose(h, (0, 3, 1, 2))


if __name__ == "__main__":
    key = jax.random.PRNGKey(0)
    q_bf16 = lambda a: a.astype(jnp.bfloat16).astype(jnp.float32)  # bf16-representable

    def bn_fold(kg, kb, km, kv, c, eps=1e-5):
        gamma = jax.random.uniform(kg, (c,), jnp.float32, 0.5, 1.5)
        beta = jax.random.normal(kb, (c,), jnp.float32) * 0.1
        mean = jax.random.normal(km, (c,), jnp.float32) * 0.1
        var = jax.random.uniform(kv, (c,), jnp.float32, 0.5, 1.5)
        scale = gamma / jnp.sqrt(var + eps)
        return scale, beta - mean * scale

    def make_params(k, inp, oup, expand_ratio):
        hidden = int(round(inp * expand_ratio))
        ks = jax.random.split(k, 15)
        if expand_ratio != 1:
            w1 = q_bf16(jax.random.normal(ks[0], (inp, hidden), jnp.float32) * 0.3)
            s1, b1 = bn_fold(ks[1], ks[2], ks[3], ks[4], hidden)
        else:
            w1 = s1 = b1 = None
        wdw = jax.random.normal(ks[5], (3, 3, hidden), jnp.float32) * 0.3
        s2, b2 = bn_fold(ks[6], ks[7], ks[8], ks[9], hidden)
        w3 = q_bf16(jax.random.normal(ks[10], (hidden, oup), jnp.float32) * 0.3)
        s3, b3 = bn_fold(ks[11], ks[12], ks[13], ks[14], oup)
        return (w1, s1, b1, wdw, s2, b2, w3, s3, b3)

    # (inp, oup, H, W, stride, expand_ratio, tile_rows)
    configs = [
        (4, 4, 16, 16, 1, 6, 8),    # residual branch + expand, 2 row tiles (halo path)
        (4, 8, 16, 16, 2, 6, 4),    # stride-2 phase-split path, 2 row tiles
        (8, 16, 16, 16, 1, 1, 8),   # expand_ratio == 1 (no expand conv), no residual
    ]

    N = 2
    for idx, (inp, oup, H, W, stride, er, tr) in enumerate(configs):
        kk = jax.random.fold_in(key, idx)
        kp, kx = jax.random.split(kk)
        params = make_params(kp, inp, oup, er)
        x = q_bf16(jax.random.normal(kx, (N, inp, H, W), jnp.float32))

        out = inverted_residual_pallas(x, params, stride=stride,
                                       expand_ratio=er, tile_rows=tr)
        out = jax.block_until_ready(out)
        ref = inverted_residual_ref(x, params, stride=stride, expand_ratio=er)

        assert out.shape == ref.shape, (out.shape, ref.shape)
        err = float(jnp.max(jnp.abs(out - ref)))
        scale = float(jnp.max(jnp.abs(ref))) + 1e-6
        # bf16 MXU operands (f32 accumulation) -> looser-than-f32 tolerance
        assert err <= 2.5e-2 * scale + 5e-2, (idx, err, scale)

    print("KERNEL_OK")
</pallas_src>

<mosaic_0001>
module attributes {stable_mosaic.version = 11 : i64} {
  func.func @_ir_kernel_s1(%arg0: i32, %arg1: i32, %arg2: memref<1x1x16x4xf32, #tpu.memory_space<vmem>>, %arg3: memref<1x8x16x4xf32, #tpu.memory_space<vmem>>, %arg4: memref<1x1x16x4xf32, #tpu.memory_space<vmem>>, %arg5: memref<4x24xbf16, #tpu.memory_space<vmem>>, %arg6: memref<1x24xf32, #tpu.memory_space<vmem>>, %arg7: memref<1x24xf32, #tpu.memory_space<vmem>>, %arg8: memref<9x1x24xf32, #tpu.memory_space<vmem>>, %arg9: memref<1x24xf32, #tpu.memory_space<vmem>>, %arg10: memref<1x24xf32, #tpu.memory_space<vmem>>, %arg11: memref<24x4xbf16, #tpu.memory_space<vmem>>, %arg12: memref<1x4xf32, #tpu.memory_space<vmem>>, %arg13: memref<1x4xf32, #tpu.memory_space<vmem>>, %arg14: memref<1x8x16x4xf32, #tpu.memory_space<vmem>>, %arg15: memref<10x32x24xf32, #tpu.memory_space<vmem>>) attributes {dimension_semantics = [#tpu.dimension_semantics<parallel>, #tpu.dimension_semantics<parallel>], iteration_bounds = array<i64: 2, 2>, scalar_prefetch = 0 : i64, scratch_operands = 1 : i64, tpu.core_type = #tpu.core_type<tc>, window_params = [{transform_indices = @transform_0, window_bounds = array<i64: 1, 1, 16, 4>}, {transform_indices = @transform_1, window_bounds = array<i64: 1, 8, 16, 4>}, {transform_indices = @transform_2, window_bounds = array<i64: 1, 1, 16, 4>}, {pipeline_mode = #tpu.pipeline_mode<synchronous>, transform_indices = @transform_3, window_bounds = array<i64: 4, 24>}, {pipeline_mode = #tpu.pipeline_mode<synchronous>, transform_indices = @transform_4, window_bounds = array<i64: 1, 24>}, {pipeline_mode = #tpu.pipeline_mode<synchronous>, transform_indices = @transform_5, window_bounds = array<i64: 1, 24>}, {pipeline_mode = #tpu.pipeline_mode<synchronous>, transform_indices = @transform_6, window_bounds = array<i64: 9, 1, 24>}, {pipeline_mode = #tpu.pipeline_mode<synchronous>, transform_indices = @transform_7, window_bounds = array<i64: 1, 24>}, {pipeline_mode = #tpu.pipeline_mode<synchronous>, transform_indices = @transform_8, window_bounds = array<i64: 1, 24>}, {pipeline_mode = #tpu.pipeline_mode<synchronous>, transform_indices = @transform_9, window_bounds = array<i64: 24, 4>}, {pipeline_mode = #tpu.pipeline_mode<synchronous>, transform_indices = @transform_10, window_bounds = array<i64: 1, 4>}, {pipeline_mode = #tpu.pipeline_mode<synchronous>, transform_indices = @transform_11, window_bounds = array<i64: 1, 4>}, {transform_indices = @transform_12, window_bounds = array<i64: 1, 8, 16, 4>}]} {
    %c0 = arith.constant 0 : index
    %c0_0 = arith.constant 0 : index
    %c0_1 = arith.constant 0 : index
    %c0_2 = arith.constant 0 : index
    %0 = vector.load %arg2[%c0, %c0_0, %c0_1, %c0_2] : memref<1x1x16x4xf32, #tpu.memory_space<vmem>>, vector<1x1x16x4xf32>
    %1 = vector.shape_cast %0 : vector<1x1x16x4xf32> to vector<1x16x4xf32>
    %c0_3 = arith.constant 0 : index
    %c0_4 = arith.constant 0 : index
    %c0_5 = arith.constant 0 : index
    %c0_6 = arith.constant 0 : index
    %2 = vector.load %arg3[%c0_3, %c0_4, %c0_5, %c0_6] : memref<1x8x16x4xf32, #tpu.memory_space<vmem>>, vector<1x8x16x4xf32>
    %3 = vector.shape_cast %2 : vector<1x8x16x4xf32> to vector<8x16x4xf32>
    %c0_7 = arith.constant 0 : index
    %c0_8 = arith.constant 0 : index
    %c0_9 = arith.constant 0 : index
    %c0_10 = arith.constant 0 : index
    %4 = vector.load %arg4[%c0_7, %c0_8, %c0_9, %c0_10] : memref<1x1x16x4xf32, #tpu.memory_space<vmem>>, vector<1x1x16x4xf32>
    %5 = vector.shape_cast %4 : vector<1x1x16x4xf32> to vector<1x16x4xf32>
    %6 = tpu.concatenate %1, %3, %5 in 0 : vector<1x16x4xf32>, vector<8x16x4xf32>, vector<1x16x4xf32> -> vector<10x16x4xf32>
    %7 = arith.truncf %6 : vector<10x16x4xf32> to vector<10x16x4xbf16>
    %8 = vector.shape_cast %7 : vector<10x16x4xbf16> to vector<160x4xbf16>
    %c0_11 = arith.constant 0 : index
    %c0_12 = arith.constant 0 : index
    %9 = vector.load %arg5[%c0_11, %c0_12] : memref<4x24xbf16, #tpu.memory_space<vmem>>, vector<4x24xbf16>
    %cst = arith.constant dense<0.000000e+00> : vector<160x24xf32>
    %10 = tpu.matmul %8, %9, %cst {dimension_numbers = #tpu.dot_dimension_numbers<[1], [0], [0], [1], [0, 0, 1, 1], [], []>} : vector<160x4xbf16>, vector<4x24xbf16>, vector<160x24xf32> -> vector<160x24xf32>
    %c0_13 = arith.constant 0 : index
    %c0_14 = arith.constant 0 : index
    %11 = vector.load %arg6[%c0_13, %c0_14] : memref<1x24xf32, #tpu.memory_space<vmem>>, vector<1x24xf32>
    %12 = vector.broadcast %11 : vector<1x24xf32> to vector<160x24xf32>
    %13 = arith.mulf %10, %12 : vector<160x24xf32>
    %c0_15 = arith.constant 0 : index
    %c0_16 = arith.constant 0 : index
    %14 = vector.load %arg7[%c0_15, %c0_16] : memref<1x24xf32, #tpu.memory_space<vmem>>, vector<1x24xf32>
    %15 = vector.broadcast %14 : vector<1x24xf32> to vector<160x24xf32>
    %16 = arith.addf %13, %15 : vector<160x24xf32>
    %cst_17 = arith.constant 0.000000e+00 : f32
    %cst_18 = arith.constant 6.000000e+00 : f32
    %17 = vector.broadcast %cst_17 : f32 to vector<160x24xf32>
    %18 = arith.maximumf %17, %16 : vector<160x24xf32>
    %19 = vector.broadcast %cst_18 : f32 to vector<160x24xf32>
    %20 = arith.minimumf %19, %18 : vector<160x24xf32>
    %21 = vector.shape_cast %20 : vector<160x24xf32> to vector<10x16x24xf32>
    %22 = tpu.iota {dimensions = array<i32: 0>} : vector<10x1x1xi32>
    %c8_i32 = arith.constant 8 : i32
    %23 = arith.muli %arg1, %c8_i32 : i32
    %c1_i32 = arith.constant 1 : i32
    %24 = arith.subi %23, %c1_i32 : i32
    %25 = vector.broadcast %24 : i32 to vector<10x1x1xi32>
    %26 = arith.addi %22, %25 : vector<10x1x1xi32>
    %c0_i32 = arith.constant 0 : i32
    %27 = vector.broadcast %c0_i32 : i32 to vector<10x1x1xi32>
    %28 = arith.cmpi sge, %26, %27 : vector<10x1x1xi32>
    %c16_i32 = arith.constant 16 : i32
    %29 = vector.broadcast %c16_i32 : i32 to vector<10x1x1xi32>
    %30 = arith.cmpi slt, %26, %29 : vector<10x1x1xi32>
    %31 = arith.andi %28, %30 : vector<10x1x1xi1>
    %cst_19 = arith.constant 0.000000e+00 : f32
    %32 = vector.shape_cast %31 : vector<10x1x1xi1> to vector<10x1x1xi1>
    %33 = vector.broadcast %32 : vector<10x1x1xi1> to vector<10x16x24xi1>
    %34 = vector.broadcast %cst_19 : f32 to vector<10x16x24xf32>
    %35 = arith.select %33, %21, %34 : vector<10x16x24xi1>, vector<10x16x24xf32>
    %c0_20 = arith.constant 0 : index
    %c8 = arith.constant 8 : index
    %c0_21 = arith.constant 0 : index
    %36 = vector.load %arg15[%c0_20, %c8, %c0_21] : memref<10x32x24xf32, #tpu.memory_space<vmem>>, vector<10x16x24xf32>
    tpu.vector_store %arg15[%c0_20, %c8, %c0_21], %35 {strides = array<i32>} : memref<10x32x24xf32, #tpu.memory_space<vmem>>, vector<10x16x24xf32>,
    %37 = tpu.iota {dimensions = array<i32: 1>} : vector<1x16x1xi32>
    %c1_i32_22 = arith.constant 1 : i32
    %38 = vector.broadcast %c1_i32_22 : i32 to vector<1x16x1xi32>
    %39 = arith.cmpi sge, %37, %38 : vector<1x16x1xi32>
    %c0_23 = arith.constant 0 : index
    %c7 = arith.constant 7 : index
    %c0_24 = arith.constant 0 : index
    %40 = vector.load %arg15[%c0_23, %c7, %c0_24] : memref<10x32x24xf32, #tpu.memory_space<vmem>>, vector<10x16x24xf32>
    %cst_25 = arith.constant 0.000000e+00 : f32
    %41 = vector.shape_cast %39 : vector<1x16x1xi1> to vector<1x16x1xi1>
    %42 = vector.broadcast %41 : vector<1x16x1xi1> to vector<10x16x24xi1>
    %43 = vector.broadcast %cst_25 : f32 to vector<10x16x24xf32>
    %44 = arith.select %42, %40, %43 : vector<10x16x24xi1>, vector<10x16x24xf32>
    %c14_i32 = arith.constant 14 : i32
    %45 = vector.broadcast %c14_i32 : i32 to vector<1x16x1xi32>
    %46 = arith.cmpi sle, %37, %45 : vector<1x16x1xi32>
    %c0_26 = arith.constant 0 : index
    %c9 = arith.constant 9 : index
    %c0_27 = arith.constant 0 : index
    %47 = vector.load %arg15[%c0_26, %c9, %c0_27] : memref<10x32x24xf32, #tpu.memory_space<vmem>>, vector<10x16x24xf32>
    %cst_28 = arith.constant 0.000000e+00 : f32
    %48 = vector.shape_cast %46 : vector<1x16x1xi1> to vector<1x16x1xi1>
    %49 = vector.broadcast %48 : vector<1x16x1xi1> to vector<10x16x24xi1>
    %50 = vector.broadcast %cst_28 : f32 to vector<10x16x24xf32>
    %51 = arith.select %49, %47, %50 : vector<10x16x24xi1>, vector<10x16x24xf32>
    %c0_29 = arith.constant 0 : index
    %c0_30 = arith.constant 0 : index
    %c0_31 = arith.constant 0 : index
    %52 = vector.load %arg8[%c0_29, %c0_30, %c0_31] : memref<9x1x24xf32, #tpu.memory_space<vmem>>, vector<9x1x24xf32>
    %53 = vector.extract_strided_slice %44 {offsets = [0, 0, 0], sizes = [8, 16, 24], strides = [1, 1, 1]} : vector<10x16x24xf32> to vector<8x16x24xf32>
    %54 = vector.extract_strided_slice %52 {offsets = [0, 0, 0], sizes = [1, 1, 24], strides = [1, 1, 1]} : vector<9x1x24xf32> to vector<1x1x24xf32>
    %55 = vector.shape_cast %54 : vector<1x1x24xf32> to vector<1x24xf32>
    %56 = vector.shape_cast %55 : vector<1x24xf32> to vector<1x1x24xf32>
    %57 = vector.broadcast %56 : vector<1x1x24xf32> to vector<8x16x24xf32>
    %58 = arith.mulf %53, %57 : vector<8x16x24xf32>
    %59 = vector.extract_strided_slice %35 {offsets = [0, 0, 0], sizes = [8, 16, 24], strides = [1, 1, 1]} : vector<10x16x24xf32> to vector<8x16x24xf32>
    %60 = vector.extract_strided_slice %52 {offsets = [1, 0, 0], sizes = [1, 1, 24], strides = [1, 1, 1]} : vector<9x1x24xf32> to vector<1x1x24xf32>
    %61 = vector.shape_cast %60 : vector<1x1x24xf32> to vector<1x24xf32>
    %62 = vector.shape_cast %61 : vector<1x24xf32> to vector<1x1x24xf32>
    %63 = vector.broadcast %62 : vector<1x1x24xf32> to vector<8x16x24xf32>
    %64 = arith.mulf %59, %63 : vector<8x16x24xf32>
    %65 = arith.addf %58, %64 : vector<8x16x24xf32>
    %66 = vector.extract_strided_slice %51 {offsets = [0, 0, 0], sizes = [8, 16, 24], strides = [1, 1, 1]} : vector<10x16x24xf32> to vector<8x16x24xf32>
    %67 = vector.extract_strided_slice %52 {offsets = [2, 0, 0], sizes = [1, 1, 24], strides = [1, 1, 1]} : vector<9x1x24xf32> to vector<1x1x24xf32>
    %68 = vector.shape_cast %67 : vector<1x1x24xf32> to vector<1x24xf32>
    %69 = vector.shape_cast %68 : vector<1x24xf32> to vector<1x1x24xf32>
    %70 = vector.broadcast %69 : vector<1x1x24xf32> to vector<8x16x24xf32>
    %71 = arith.mulf %66, %70 : vector<8x16x24xf32>
    %72 = arith.addf %65, %71 : vector<8x16x24xf32>
    %73 = vector.extract_strided_slice %44 {offsets = [1, 0, 0], sizes = [8, 16, 24], strides = [1, 1, 1]} : vector<10x16x24xf32> to vector<8x16x24xf32>
    %74 = vector.extract_strided_slice %52 {offsets = [3, 0, 0], sizes = [1, 1, 24], strides = [1, 1, 1]} : vector<9x1x24xf32> to vector<1x1x24xf32>
    %75 = vector.shape_cast %74 : vector<1x1x24xf32> to vector<1x24xf32>
    %76 = vector.shape_cast %75 : vector<1x24xf32> to vector<1x1x24xf32>
    %77 = vector.broadcast %76 : vector<1x1x24xf32> to vector<8x16x24xf32>
    %78 = arith.mulf %73, %77 : vector<8x16x24xf32>
    %79 = arith.addf %72, %78 : vector<8x16x24xf32>
    %80 = vector.extract_strided_slice %35 {offsets = [1, 0, 0], sizes = [8, 16, 24], strides = [1, 1, 1]} : vector<10x16x24xf32> to vector<8x16x24xf32>
    %81 = vector.extract_strided_slice %52 {offsets = [4, 0, 0], sizes = [1, 1, 24], strides = [1, 1, 1]} : vector<9x1x24xf32> to vector<1x1x24xf32>
    %82 = vector.shape_cast %81 : vector<1x1x24xf32> to vector<1x24xf32>
    %83 = vector.shape_cast %82 : vector<1x24xf32> to vector<1x1x24xf32>
    %84 = vector.broadcast %83 : vector<1x1x24xf32> to vector<8x16x24xf32>
    %85 = arith.mulf %80, %84 : vector<8x16x24xf32>
    %86 = arith.addf %79, %85 : vector<8x16x24xf32>
    %87 = vector.extract_strided_slice %51 {offsets = [1, 0, 0], sizes = [8, 16, 24], strides = [1, 1, 1]} : vector<10x16x24xf32> to vector<8x16x24xf32>
    %88 = vector.extract_strided_slice %52 {offsets = [5, 0, 0], sizes = [1, 1, 24], strides = [1, 1, 1]} : vector<9x1x24xf32> to vector<1x1x24xf32>
    %89 = vector.shape_cast %88 : vector<1x1x24xf32> to vector<1x24xf32>
    %90 = vector.shape_cast %89 : vector<1x24xf32> to vector<1x1x24xf32>
    %91 = vector.broadcast %90 : vector<1x1x24xf32> to vector<8x16x24xf32>
    %92 = arith.mulf %87, %91 : vector<8x16x24xf32>
    %93 = arith.addf %86, %92 : vector<8x16x24xf32>
    %94 = vector.extract_strided_slice %44 {offsets = [2, 0, 0], sizes = [8, 16, 24], strides = [1, 1, 1]} : vector<10x16x24xf32> to vector<8x16x24xf32>
    %95 = vector.extract_strided_slice %52 {offsets = [6, 0, 0], sizes = [1, 1, 24], strides = [1, 1, 1]} : vector<9x1x24xf32> to vector<1x1x24xf32>
    %96 = vector.shape_cast %95 : vector<1x1x24xf32> to vector<1x24xf32>
    %97 = vector.shape_cast %96 : vector<1x24xf32> to vector<1x1x24xf32>
    %98 = vector.broadcast %97 : vector<1x1x24xf32> to vector<8x16x24xf32>
    %99 = arith.mulf %94, %98 : vector<8x16x24xf32>
    %100 = arith.addf %93, %99 : vector<8x16x24xf32>
    %101 = vector.extract_strided_slice %35 {offsets = [2, 0, 0], sizes = [8, 16, 24], strides = [1, 1, 1]} : vector<10x16x24xf32> to vector<8x16x24xf32>
    %102 = vector.extract_strided_slice %52 {offsets = [7, 0, 0], sizes = [1, 1, 24], strides = [1, 1, 1]} : vector<9x1x24xf32> to vector<1x1x24xf32>
    %103 = vector.shape_cast %102 : vector<1x1x24xf32> to vector<1x24xf32>
    %104 = vector.shape_cast %103 : vector<1x24xf32> to vector<1x1x24xf32>
    %105 = vector.broadcast %104 : vector<1x1x24xf32> to vector<8x16x24xf32>
    %106 = arith.mulf %101, %105 : vector<8x16x24xf32>
    %107 = arith.addf %100, %106 : vector<8x16x24xf32>
    %108 = vector.extract_strided_slice %51 {offsets = [2, 0, 0], sizes = [8, 16, 24], strides = [1, 1, 1]} : vector<10x16x24xf32> to vector<8x16x24xf32>
    %109 = vector.extract_strided_slice %52 {offsets = [8, 0, 0], sizes = [1, 1, 24], strides = [1, 1, 1]} : vector<9x1x24xf32> to vector<1x1x24xf32>
    %110 = vector.shape_cast %109 : vector<1x1x24xf32> to vector<1x24xf32>
    %111 = vector.shape_cast %110 : vector<1x24xf32> to vector<1x1x24xf32>
    %112 = vector.broadcast %111 : vector<1x1x24xf32> to vector<8x16x24xf32>
    %113 = arith.mulf %108, %112 : vector<8x16x24xf32>
    %114 = arith.addf %107, %113 : vector<8x16x24xf32>
    %c0_32 = arith.constant 0 : index
    %c0_33 = arith.constant 0 : index
    %115 = vector.load %arg9[%c0_32, %c0_33] : memref<1x24xf32, #tpu.memory_space<vmem>>, vector<1x24xf32>
    %116 = vector.shape_cast %115 : vector<1x24xf32> to vector<1x1x24xf32>
    %117 = vector.broadcast %116 : vector<1x1x24xf32> to vector<8x16x24xf32>
    %118 = arith.mulf %114, %117 : vector<8x16x24xf32>
    %c0_34 = arith.constant 0 : index
    %c0_35 = arith.constant 0 : index
    %119 = vector.load %arg10[%c0_34, %c0_35] : memref<1x24xf32, #tpu.memory_space<vmem>>, vector<1x24xf32>
    %120 = vector.shape_cast %119 : vector<1x24xf32> to vector<1x1x24xf32>
    %121 = vector.broadcast %120 : vector<1x1x24xf32> to vector<8x16x24xf32>
    %122 = arith.addf %118, %121 : vector<8x16x24xf32>
    %cst_36 = arith.constant 0.000000e+00 : f32
    %cst_37 = arith.constant 6.000000e+00 : f32
    %123 = vector.broadcast %cst_36 : f32 to vector<8x16x24xf32>
    %124 = arith.maximumf %123, %122 : vector<8x16x24xf32>
    %125 = vector.broadcast %cst_37 : f32 to vector<8x16x24xf32>
    %126 = arith.minimumf %125, %124 : vector<8x16x24xf32>
    %127 = arith.truncf %126 : vector<8x16x24xf32> to vector<8x16x24xbf16>
    %128 = vector.shape_cast %127 : vector<8x16x24xbf16> to vector<128x24xbf16>
    %c0_38 = arith.constant 0 : index
    %c0_39 = arith.constant 0 : index
    %129 = vector.load %arg11[%c0_38, %c0_39] : memref<24x4xbf16, #tpu.memory_space<vmem>>, vector<24x4xbf16>
    %cst_40 = arith.constant dense<0.000000e+00> : vector<128x4xf32>
    %130 = tpu.matmul %128, %129, %cst_40 {dimension_numbers = #tpu.dot_dimension_numbers<[1], [0], [0], [1], [0, 0, 1, 1], [], []>} : vector<128x24xbf16>, vector<24x4xbf16>, vector<128x4xf32> -> vector<128x4xf32>
    %c0_41 = arith.constant 0 : index
    %c0_42 = arith.constant 0 : index
    %131 = vector.load %arg12[%c0_41, %c0_42] : memref<1x4xf32, #tpu.memory_space<vmem>>, vector<1x4xf32>
    %132 = vector.broadcast %131 : vector<1x4xf32> to vector<128x4xf32>
    %133 = arith.mulf %130, %132 : vector<128x4xf32>
    %c0_43 = arith.constant 0 : index
    %c0_44 = arith.constant 0 : index
    %134 = vector.load %arg13[%c0_43, %c0_44] : memref<1x4xf32, #tpu.memory_space<vmem>>, vector<1x4xf32>
    %135 = vector.broadcast %134 : vector<1x4xf32> to vector<128x4xf32>
    %136 = arith.addf %133, %135 : vector<128x4xf32>
    %137 = vector.shape_cast %136 : vector<128x4xf32> to vector<8x16x4xf32>
    %c0_45 = arith.constant 0 : index
    %c0_46 = arith.constant 0 : index
    %c0_47 = arith.constant 0 : index
    %c0_48 = arith.constant 0 : index
    %138 = vector.load %arg3[%c0_45, %c0_46, %c0_47, %c0_48] : memref<1x8x16x4xf32, #tpu.memory_space<vmem>>, vector<1x8x16x4xf32>
    %139 = vector.shape_cast %138 : vector<1x8x16x4xf32> to vector<8x16x4xf32>
    %140 = arith.addf %137, %139 : vector<8x16x4xf32>
    %c0_49 = arith.constant 0 : index
    %c0_50 = arith.constant 0 : index
    %c0_51 = arith.constant 0 : index
    %c0_52 = arith.constant 0 : index
    %141 = vector.load %arg14[%c0_49, %c0_50, %c0_51, %c0_52] : memref<1x8x16x4xf32, #tpu.memory_space<vmem>>, vector<1x8x16x4xf32>
    %142 = vector.shape_cast %141 : vector<1x8x16x4xf32> to vector<8x16x4xf32>
    %143 = vector.shape_cast %140 : vector<8x16x4xf32> to vector<1x8x16x4xf32>
    tpu.vector_store %arg14[%c0_49, %c0_50, %c0_51, %c0_52], %143 {strides = array<i32>} : memref<1x8x16x4xf32, #tpu.memory_space<vmem>>, vector<1x8x16x4xf32>,
    return
  }
  func.func @transform_0(%arg0: i32, %arg1: i32) -> (i32, i32, i32, i32) {
    %c8_i32 = arith.constant 8 : i32
    %0 = arith.muli %arg1, %c8_i32 : i32
    %c1_i32 = arith.constant 1 : i32
    %1 = arith.subi %0, %c1_i32 : i32
    %c0_i32 = arith.constant 0 : i32
    %2 = arith.maxsi %1, %c0_i32 : i32
    %c0_i32_0 = arith.constant 0 : i32
    %c0_i32_1 = arith.constant 0 : i32
    %c0_i32_2 = arith.constant 0 : i32
    return %arg0, %2, %c0_i32_0, %c0_i32_1 : i32, i32, i32, i32
  }
  func.func @transform_1(%arg0: i32, %arg1: i32) -> (i32, i32, i32, i32) {
    %c0_i32 = arith.constant 0 : i32
    %c0_i32_0 = arith.constant 0 : i32
    %c0_i32_1 = arith.constant 0 : i32
    return %arg0, %arg1, %c0_i32, %c0_i32_0 : i32, i32, i32, i32
  }
  func.func @transform_2(%arg0: i32, %arg1: i32) -> (i32, i32, i32, i32) {
    %c1_i32 = arith.constant 1 : i32
    %0 = arith.addi %arg1, %c1_i32 : i32
    %c8_i32 = arith.constant 8 : i32
    %1 = arith.muli %0, %c8_i32 : i32
    %c15_i32 = arith.constant 15 : i32
    %2 = arith.minsi %1, %c15_i32 : i32
    %c0_i32 = arith.constant 0 : i32
    %c0_i32_0 = arith.constant 0 : i32
    %c0_i32_1 = arith.constant 0 : i32
    return %arg0, %2, %c0_i32, %c0_i32_0 : i32, i32, i32, i32
  }
  func.func @transform_3(%arg0: i32, %arg1: i32) -> (i32, i32) {
    %c0_i32 = arith.constant 0 : i32
    %c0_i32_0 = arith.constant 0 : i32
    %c0_i32_1 = arith.constant 0 : i32
    return %c0_i32, %c0_i32_0 : i32, i32
  }
  func.func @transform_4(%arg0: i32, %arg1: i32) -> (i32, i32) {
    %c0_i32 = arith.constant 0 : i32
    %c0_i32_0 = arith.constant 0 : i32
    %c0_i32_1 = arith.constant 0 : i32
    return %c0_i32, %c0_i32_0 : i32, i32
  }
  func.func @transform_5(%arg0: i32, %arg1: i32) -> (i32, i32) {
    %c0_i32 = arith.constant 0 : i32
    %c0_i32_0 = arith.constant 0 : i32
    %c0_i32_1 = arith.constant 0 : i32
    return %c0_i32, %c0_i32_0 : i32, i32
  }
  func.func @transform_6(%arg0: i32, %arg1: i32) -> (i32, i32, i32) {
    %c0_i32 = arith.constant 0 : i32
    %c0_i32_0 = arith.constant 0 : i32
    %c0_i32_1 = arith.constant 0 : i32
    %c0_i32_2 = arith.constant 0 : i32
    return %c0_i32, %c0_i32_0, %c0_i32_1 : i32, i32, i32
  }
  func.func @transform_7(%arg0: i32, %arg1: i32) -> (i32, i32) {
    %c0_i32 = arith.constant 0 : i32
    %c0_i32_0 = arith.constant 0 : i32
    %c0_i32_1 = arith.constant 0 : i32
    return %c0_i32, %c0_i32_0 : i32, i32
  }
  func.func @transform_8(%arg0: i32, %arg1: i32) -> (i32, i32) {
    %c0_i32 = arith.constant 0 : i32
    %c0_i32_0 = arith.constant 0 : i32
    %c0_i32_1 = arith.constant 0 : i32
    return %c0_i32, %c0_i32_0 : i32, i32
  }
  func.func @transform_9(%arg0: i32, %arg1: i32) -> (i32, i32) {
    %c0_i32 = arith.constant 0 : i32
    %c0_i32_0 = arith.constant 0 : i32
    %c0_i32_1 = arith.constant 0 : i32
    return %c0_i32, %c0_i32_0 : i32, i32
  }
  func.func @transform_10(%arg0: i32, %arg1: i32) -> (i32, i32) {
    %c0_i32 = arith.constant 0 : i32
    %c0_i32_0 = arith.constant 0 : i32
    %c0_i32_1 = arith.constant 0 : i32
    return %c0_i32, %c0_i32_0 : i32, i32
  }
  func.func @transform_11(%arg0: i32, %arg1: i32) -> (i32, i32) {
    %c0_i32 = arith.constant 0 : i32
    %c0_i32_0 = arith.constant 0 : i32
    %c0_i32_1 = arith.constant 0 : i32
    return %c0_i32, %c0_i32_0 : i32, i32
  }
  func.func @transform_12(%arg0: i32, %arg1: i32) -> (i32, i32, i32, i32) {
    %c0_i32 = arith.constant 0 : i32
    %c0_i32_0 = arith.constant 0 : i32
    %c0_i32_1 = arith.constant 0 : i32
    return %arg0, %arg1, %c0_i32, %c0_i32_0 : i32, i32, i32, i32
  }
}

</mosaic_0001>

<bundles_post_ra>
// kernel: tpu_custom_call.1
= control target key start
LH: loop header
LB: loop body
LE: loop exit
PB: predicated region body
PF: predicated region fallthrough
CT: control target
= control target key end

     0   :  { %s2142_s21 = smov 0   ;;  %s2144_s22 = smov 0   ;;  %s3139_s0 = inlined_call_operand.vmem [shape: f32[2,16,16,4], index: 0, kind: input, shape index: {}]   ;;  %s3140_s1 = inlined_call_operand.vmem [shape: f32[2,16,16,4], index: 1, kind: input, shape index: {}]   ;;  %s3141_s2 = inlined_call_operand.vmem [shape: f32[2,16,16,4], index: 2, kind: input, shape index: {}]   ;;  %s3142_s3 = inlined_call_operand.vmem [shape: bf16[4,24], index: 3, kind: input, shape index: {}]   ;;  %s3143_s4 = inlined_call_operand.vmem [shape: f32[1,24], index: 4, kind: input, shape index: {}]   ;;  %s3144_s5 = inlined_call_operand.vmem [shape: f32[1,24], index: 5, kind: input, shape index: {}]   ;;  %s3145_s6 = inlined_call_operand.vmem [shape: f32[9,1,24], index: 6, kind: input, shape index: {}]   ;;  %s3146_s7 = inlined_call_operand.vmem [shape: f32[1,24], index: 7, kind: input, shape index: {}]   ;;  %s3147_s8 = inlined_call_operand.vmem [shape: f32[1,24], index: 8, kind: input, shape index: {}]   ;;  %s3148_s9 = inlined_call_operand.vmem [shape: bf16[24,4], index: 9, kind: input, shape index: {}]   ;;  %s3149_s10 = inlined_call_operand.vmem [shape: f32[1,4], index: 10, kind: input, shape index: {}]   ;;  %s3150_s11 = inlined_call_operand.vmem [shape: f32[1,4], index: 11, kind: input, shape index: {}]   ;;  %s3151_s12 = inlined_call_operand.vmem [shape: f32[2,16,16,4], index: 12, kind: output, shape index: {}]  }
   0x1   :  { %3162 = sst [smem:[#allocation32_spill]] %s3142_s3  ;;  %s2146_s23 = smov 0  }
   0x2   :  { %s2148_s24 = smov 0   ;;  %s2150_s25 = smov 0  }
   0x3 LB: > { %3163 = sst [smem:[#allocation3_spill]] %s2071_s24  ;;  %s31_s26 = sadd.s32 1, %s2067_s23  ;;  %s2075_s25 = sphi %s2150_s25, %s22_s25   ;;  %s2071_s24 = sphi %s2148_s24, %s3247_s24   ;;  %s2067_s23 = sphi %s2146_s23, %s3246_s23   ;;  %s2063_s22 = sphi %s2144_s22, %s3242_s22   ;;  %s2059_s21 = sphi %s2142_s21, %s3245_s21  }
   0x4   : > { %s34_s27 = sadd.s32 1, %s2071_s24  ;;  %p32_p0 = scmp.ge.s32.totalorder %s31_s26, 2 }
   0x5   : > { %p1857_p1 = scmp.ge.s32.totalorder %s2075_s25, 1  ;;  %p448_p2 = scmp.lt.s32.totalorder %s2075_s25, 5 }
   0x6   : > { %s3249_s26 = smov (%p32_p0, %s31_s26), 0  ;;  %s3251_s27 = smov (!%p32_p0, %s34_s27), %s2071_s24 }
   0x7   : > { %3164 = sst [smem:[#allocation4_spill]] %s3249_s26  ;;  %p449_p3 = pnand %p1857_p1, %p448_p2 }
   0x8   : > { %p36_p4 = scmp.ge.s32.totalorder %s3251_s27, 2 }
   0x9   : > { %452 = sbr.rel (%p449_p3) target bundleno = 603 (0x25b), region = 68 }
   0xa   : > { %s3253_s27 = smov (%p36_p4, %s3251_s27), 0 }
   0xb   : > { %3165 = sst [smem:[#allocation5_spill]] %s3253_s27 }
  0x10   : > { %s3166_s3 = sld [smem:[#allocation32_spill]]  ;;  %vm645_vm0 = vcmask 1041408   ;;  %s2175_s30 = sshll.u32 %s2059_s21, 3  ;;  %vm614_vm1 = vcmask 31744   ;;  %v2035_v32 = vld [vmem:[%s3148_s9] sm:$0xff]   ;;  %vm1511_vm2 = vcmask 1043456   ;;  %v959_v38 = vlaneseq }
  0x11   : > { %p530_p5 = scmp.lt.s32.totalorder %s2063_s22, 1  ;;  %s2178_s13 = sadd.s32 4294967295, %s2175_s30  ;;  %1973 = vmatprep.subr.bf16.mxu1 %v2035_v32  ;;  %v2036_v33 = vld [vmem:[%s3148_s9 + $0x8] ss:$0 sps:$4 sm:$0xff]   ;;  %v2253_v36 = vld [vmem:[%s3143_s4] ss:$0 sm:$0xff] }
  0x12   : > { %p546_p6 = scmp.lt.s32.totalorder %s2175_s30, 15  ;;  %p528_p7 = scmp.gt.s32.totalorder %s2178_s13, 0  ;;  %1974 = vmatpush3.bf16.msra.mxu1 %v2035_v32  ;;  %v1513_v34 = vsel %vm1511_vm2, %v2036_v33, 0  ;;  %v2248_v35 = vstv %s2178_s13  ;;  %v2259_v40 = vld [vmem:[%s3144_s5] ss:$0 sm:$0xff]  ;;  %v2262_v43 = vshrl.u32 %v959_v38, 7 }
  0x13   : > { %p1860_p8 = scmp.lt.s32.totalorder %s2178_s13, 15  ;;  %s3255_s22 = smov (!%p530_p5, %s2063_s22), 1  ;;  %1994 = vmatprep.subr.msk.bf16.mxu1 %vm1511_vm2, %v2036_v33  ;;  %v859_v37 = vadd.s32 1, %v2248_v35  ;;  %vm868_vm5 = vcmp.ge.s32.totalorder %v2248_v35, 0  ;;  %vm878_vm6 = vcmp.lt.s32.totalorder %v2248_v35, 16  ;;  %v861_v51 = vadd.s32 3, %v2248_v35 }
  0x14   : > { %s529_s14 = scalar_select %p528_p7, %s2178_s13, 0  ;;  %v860_v54 = vadd.s32 2, %v2248_v35  ;;  %v2280_v57 = vadd.s32 8, %v2262_v43  ;;  %vm938_vm8 = vcmask 195584   ;;  %vm962_vm9 = vcmp.ge.s32.totalorder %v2262_v43, 1  ;;  %vm2286_vm10 = vmand %vm868_vm5, %vm878_vm6 }
  0x15   : > { %s2184_s15 = sshll.u32 %s3255_s22, 5  ;;  %vm869_vm3 = vcmp.ge.s32.totalorder %v859_v37, 0  ;;  %vm879_vm4 = vcmp.lt.s32.totalorder %v859_v37, 16  ;;  %vm871_vm11 = vcmp.ge.s32.totalorder %v861_v51, 0  ;;  %vm881_vm12 = vcmp.lt.s32.totalorder %v861_v51, 16 }
  0x16   : > { %v613_v0 = vld [vmem:[%s3166_s3] sm:$0x3]  ;;  %s3257_s14 = smov (!%p1860_p8, %s529_s14), 15  ;;  %1976 = vmatpush3.bf16.msra.mxu1 %v1513_v34  ;;  %vm2275_vm7 = vmand %vm869_vm3, %vm879_vm4  ;;  %vm870_vm13 = vcmp.ge.s32.totalorder %v860_v54, 0  ;;  %vm1009_vm14 = vcmp.le.s32.totalorder %v2280_v57, 14  ;;  %vm880_vm15 = vcmp.lt.s32.totalorder %v860_v54, 16 }
  0x17   : > { %1993 = vmatprep.subr.msk.bf16.mxu0 %vm645_vm0, %v613_v0  ;;  %v647_v1 = vsel %vm645_vm0, %v613_v0, 0  ;;  %s547_s16 = scalar_select %p546_p6, %s2175_s30, 15  ;;  %vm2334_vm0 = vmand %vm871_vm11, %vm881_vm12 }
  0x18   : > { %1952 = vmatpush3.bf16.msra.mxu0 %v647_v1  ;;  %s1865_s17 = sshll.u32 %s3257_s14, 1  ;;  %s1929_s14 = sadd.s32 8, %s2175_s30  ;;  %vm2379_vm2 = vmand %vm870_vm13, %vm880_vm15 }
  0x19   : > { %s536_s18 = sadd.s32 %s2184_s15, %s1865_s17  ;;  %s1869_s19 = sshll.u32 %s547_s16, 1 }
  0x1a   : > { %s1867_s20 = sshll.u32 %s536_s18, 3  ;;  %s2189_s21 = sadd.s32 %s1869_s19, %s2184_s15 }
  0x1b   : > { %s538_s3 = scalar_lea.vmem %s3139_s0, %s1867_s20  ;;  %s1871_s27 = sshll.u32 %s2189_s21, 3 }
  0x1c   : > { %s2200_s24 = scalar_lea.vmem %s3140_s1, %s1871_s27  ;;  %v583_v2 = vld [vmem:[%s538_s3] sm:$0xff]  ;;  %v584_v3 = vld [vmem:[%s538_s3 + $0x8] sm:$0xff]  ;;  %p2209_p9 = scmp.lt.s32.totalorder %s1929_s14, 15 }
  0x1d   : > { %v603_v4 = vpack.c.bf16 %v584_v3, %v583_v2  ;;  %v585_v5 = vld [vmem:[%s2200_s24] sm:$0xff]  ;;  %v586_v6 = vld [vmem:[%s2200_s24 + $0x8] sm:$0xff]  ;;  %v587_v7 = vld [vmem:[%s2200_s24 + $0x10] sm:$0xff]  ;;  %s3048_s13 = scalar_lea.vmem %s3151_s12, %s1871_s27 }
  0x1e   : > { %v604_v8 = vpack.c.bf16 %v586_v6, %v585_v5  ;;  %v588_v9 = vld [vmem:[%s2200_s24 + $0x18] sm:$0xff]  ;;  %v589_v11 = vld [vmem:[%s2200_s24 + $0x20] sm:$0xff]  ;;  %v590_v12 = vld [vmem:[%s2200_s24 + $0x28] sm:$0xff]  ;;  %s3259_s14 = smov (!%p2209_p9, %s1929_s14), 15 }
  0x1f   : > { %1953 = vmatprep.mubr.msk.bf16.mxu0 %vm614_vm1, %v603_v4  ;;  %v605_v10 = vpack.c.bf16 %v588_v9, %v587_v7  ;;  %v591_v13 = vld [vmem:[%s2200_s24 + $0x30] sm:$0xff]  ;;  %v592_v14 = vld [vmem:[%s2200_s24 + $0x38] sm:$0xff]  ;;  %v606_v15 = vpack.c.bf16 %v590_v12, %v589_v11  ;;  %s3261_s14 = smov (!%p2209_p9, %s3259_s14), 15  ;;  %v593_v17 = vld [vmem:[%s2200_s24 + $0x40] sm:$0xff] }
  0x20   : > { %1954 = vmatmul.mubr.msk.bf16.vlgmr.msra.gmra.mrb[0].mxu0 %vm614_vm1, %v604_v8  ;;  %v607_v16 = vpack.c.bf16 %v592_v14, %v591_v13  ;;  %v594_v18 = vld [vmem:[%s2200_s24 + $0x48] sm:$0xff]  ;;  %v595_v19 = vld [vmem:[%s2200_s24 + $0x50] sm:$0xff]  ;;  %v596_v20 = vld [vmem:[%s2200_s24 + $0x58] sm:$0xff]  ;;  %s1876_s26 = sshll.u32 %s3261_s14, 1  ;;  %v2308_v13 = vadd.s32 5, %v2248_v35 }
  0x21   : > { %1957 = vmatprep.mubr.msk.bf16.mxu0 %vm614_vm1, %v605_v10  ;;  %v608_v21 = vpack.c.bf16 %v594_v18, %v593_v17  ;;  %v609_v22 = vpack.c.bf16 %v596_v20, %v595_v19  ;;  %s564_s30 = sadd.s32 %s1876_s26, %s2184_s15  ;;  %v597_v23 = vld [vmem:[%s2200_s24 + $0x60] sm:$0xff]  ;;  %v598_v24 = vld [vmem:[%s2200_s24 + $0x68] sm:$0xff]  ;;  %v599_v25 = vld [vmem:[%s2200_s24 + $0x70] sm:$0xff]  ;;  %v2320_v17 = vadd.s32 4, %v2248_v35  ;;  %v2323_v18 = vadd.s32 7, %v2248_v35 }
  0x22   : > { %v600_v26 = vld [vmem:[%s2200_s24 + $0x78] sm:$0xff]  ;;  %s1878_s16 = sshll.u32 %s564_s30, 3  ;;  %v610_v27 = vpack.c.bf16 %v598_v24, %v597_v23  ;;  %v2300_v8 = vld [vmem:[%s3145_s6 + $0x1] ss:$0 sm:$0xff]  ;;  %v2313_v14 = vld [vmem:[%s3145_s6 + $0x4] ss:$0 sm:$0xff] }
  0x23   : > { %v611_v28 = vpack.c.bf16 %v600_v26, %v599_v25  ;;  %s566_s19 = scalar_lea.vmem %s3141_s2, %s1878_s16  ;;  %v2342_v26 = vadd.s32 9, %v2248_v35  ;;  %vm873_vm3 = vcmp.ge.s32.totalorder %v2308_v13, 0  ;;  %vm883_vm4 = vcmp.lt.s32.totalorder %v2308_v13, 16 }
  0x24   : > { %v601_v29 = vld [vmem:[%s566_s19] sm:$0xff]  ;;  %v602_v30 = vld [vmem:[%s566_s19 + $0x8] sm:$0xff]  ;;  %vm872_vm5 = vcmp.ge.s32.totalorder %v2320_v17, 0  ;;  %vm882_vm6 = vcmp.lt.s32.totalorder %v2320_v17, 16  ;;  %vm875_vm11 = vcmp.ge.s32.totalorder %v2323_v18, 0  ;;  %vm885_vm12 = vcmp.lt.s32.totalorder %v2323_v18, 16 }
  0x25   : > { %v612_v31 = vpack.c.bf16 %v602_v30, %v601_v29  ;;  %v2355_v29 = vld [vmem:[%s3145_s6 + $0x3] ss:$0 sm:$0xff] }
  0x28   : > { %1958 = vmatmul.mubr.msk.bf16.gmra.mrb[4].mxu0 %vm614_vm1, %v606_v15 }
  0x29   : > { %1961 = vmatprep.mubr.msk.bf16.mxu0 %vm614_vm1, %v607_v16 }
  0x30   : > { %1962 = vmatmul.mubr.msk.bf16.gmra.mrb[8].mxu0 %vm614_vm1, %v608_v21 }
  0x31   : > { %1965 = vmatprep.mubr.msk.bf16.mxu0 %vm614_vm1, %v609_v22  ;;  %v2329_v22 = vadd.s32 6, %v2248_v35 }
  0x33   : > { %vm874_vm13 = vcmp.ge.s32.totalorder %v2329_v22, 0  ;;  %vm884_vm15 = vcmp.lt.s32.totalorder %v2329_v22, 16 }
  0x38   : > { %1966 = vmatmul.mubr.msk.bf16.gmra.mrb[12].mxu0 %vm614_vm1, %v610_v27  ;;  %v2345_v27 = vadd.s32 8, %v2248_v35  ;;  %v2365_v35 = vld [vmem:[%s3145_s6 + $0x2] ss:$0 sm:$0xff] }
  0x39   : > { %1969 = vmatprep.mubr.msk.bf16.mxu0 %vm614_vm1, %v611_v28  ;;  %v2350_v28 = vld [vmem:[%s3145_s6] ss:$0 sm:$0xff] }
  0x40   : > { %1970 = vmatmul.mubr.msk.bf16.gmra.mrb[16].mxu0 %vm614_vm1, %v612_v31 }
  0xf3   : > { %v1955_v39 = vpop.f32.mrb[0].mxu0 }
  0xf4   : > { %v771_v41 = vmul.f32 %v1955_v39, %v2253_v36  ;;  %v683_v42 = vpop.f32.mrb[1].mxu0 }
  0xf5   : > { %v769_v44 = vmul.f32 %v2253_v36, %v683_v42  ;;  %v1956_v45 = vpop.f32.mrb[2].mxu0 }
  0xf6   : > { %v798_v46 = vadd.f32 %v2259_v40, %v771_v41  ;;  %v772_v47 = vmul.f32 %v1956_v45, %v2253_v36  ;;  %v686_v48 = vpop.f32.mrb[3].mxu0  ;;  %v2375_v41 = vld [vmem:[%s3145_s6 + $0x7] ss:$0 sm:$0xff] }
  0xf7   : > { %v796_v49 = vadd.f32 %v2259_v40, %v769_v44  ;;  %v770_v50 = vmul.f32 %v2253_v36, %v686_v48 }
  0xf8   : > { %v818_v52 = vmax.f32 %v798_v46, 0.0  ;;  %v799_v53 = vadd.f32 %v2259_v40, %v772_v47 }
  0xf9   : > { %v816_v56 = vmax.f32 %v796_v49, 0.0  ;;  %v797_v58 = vadd.f32 %v2259_v40, %v770_v50 }
  0xfa   : > { %v838_v59 = vmin.f32 %v818_v52, 6.0  ;;  %v819_v61 = vmax.f32 %v799_v53, 0.0  ;;  %v2391_v53 = vld [vmem:[%s3145_s6 + $0x5] ss:$0 sm:$0xff] }
  0xfb   : > { %v836_v62 = vmin.f32 %v816_v56, 6.0  ;;  %v817_v63 = vmax.f32 %v797_v58, 0.0  ;;  %v1959_v0 = vpop.f32.mrb[4].mxu0 }
  0xfc   : > { %v920_v1 = vsel %vm2275_vm7, %v838_v59, 0.0  ;;  %v839_v2 = vmin.f32 %v819_v61, 6.0  ;;  %v775_v3 = vmul.f32 %v1959_v0, %v2253_v36  ;;  %v699_v4 = vpop.f32.mrb[5].mxu0 }
  0xfd   : > { %941 = vst.msk [vmem:[#allocation2 + $0x28] sm:$0xff] %vm938_vm8, %v920_v1  ;;  %v918_v5 = vsel %vm2286_vm10, %v836_v62, 0.0  ;;  %v837_v6 = vmin.f32 %v817_v63, 6.0  ;;  %v1960_v7 = vpop.f32.mrb[6].mxu0  ;;  %v773_v11 = vmul.f32 %v2253_v36, %v699_v4  ;;  %v1093_v23 = vmul.f32 %v2300_v8, %v920_v1 }
  0xfe   : > { %939 = vst.msk [vmem:[#allocation2 + $0x8] sm:$0xff] %vm938_vm8, %v918_v5  ;;  %v921_v9 = vsel %vm2275_vm7, %v839_v2, 0.0  ;;  %v802_v10 = vadd.f32 %v2259_v40, %v775_v3  ;;  %v702_v12 = vpop.f32.mrb[7].mxu0  ;;  %v776_v16 = vmul.f32 %v1960_v7, %v2253_v36  ;;  %v2358_v30 = vmul.f32 %v2313_v14, %v920_v1  ;;  %vm2500_vm7 = vmand %vm873_vm3, %vm883_vm4 }
  0xff   : > { %942 = vst.msk [vmem:[#allocation2 + $0x30] sm:$0xff] %vm938_vm8, %v921_v9  ;;  %v919_v15 = vsel %vm2286_vm10, %v837_v6, 0.0  ;;  %v800_v20 = vadd.f32 %v2259_v40, %v773_v11  ;;  %v774_v21 = vmul.f32 %v2253_v36, %v702_v12  ;;  %v1091_v34 = vmul.f32 %v2300_v8, %v918_v5  ;;  %vm2560_vm10 = vmand %vm872_vm5, %vm882_vm6 }
 0x100   : > { %940 = vst.msk [vmem:[#allocation2 + $0x10] sm:$0xff] %vm938_vm8, %v919_v15  ;;  %v822_v19 = vmax.f32 %v802_v10, 0.0  ;;  %v2339_v25 = vadd.f32 %v2259_v40, %v776_v16  ;;  %3174 = vst [vmem:[#allocation6_spill] sm:$0xff] %v2358_v30  ;;  %v1094_v37 = vmul.f32 %v2300_v8, %v921_v9  ;;  %v2369_v38 = vmul.f32 %v2313_v14, %v921_v9 }
 0x101   : > { %v820_v32 = vmax.f32 %v800_v20, 0.0  ;;  %v801_v33 = vadd.f32 %v2259_v40, %v774_v21  ;;  %v1092_v39 = vmul.f32 %v2300_v8, %v919_v15  ;;  %vm877_vm3 = vcmp.ge.s32.totalorder %v2342_v26, 0 }
 0x102   : > { %v842_v31 = vmin.f32 %v822_v19, 6.0  ;;  %v823_v48 = vmax.f32 %v2339_v25, 0.0  ;;  %vm887_vm4 = vcmp.lt.s32.totalorder %v2342_v26, 16  ;;  %vm876_vm5 = vcmp.ge.s32.totalorder %v2345_v27, 0 }
 0x103   : > { %v1963_v44 = vpop.f32.mrb[8].mxu0  ;;  %v840_v47 = vmin.f32 %v820_v32, 6.0  ;;  %v821_v49 = vmax.f32 %v801_v33, 0.0  ;;  %vm886_vm6 = vcmp.lt.s32.totalorder %v2345_v27, 16 }
 0x104   : > { %v966_v45 = vld [vmem:[#allocation2 + $0x27] sm:$0xff]  ;;  %v924_v46 = vsel %vm2334_vm0, %v842_v31, 0.0  ;;  %v715_v50 = vpop.f32.mrb[9].mxu0  ;;  %v779_v56 = vmul.f32 %v1963_v44, %v2253_v36 }
 0x105   : > { %v990_v51 = vsel %vm962_vm9, %v966_v45, 0.0  ;;  %v964_v52 = vld [vmem:[#allocation2 + $0x7] sm:$0xff]  ;;  %945 = vst.msk [vmem:[#allocation2 + $0x68] sm:$0xff] %vm938_vm8, %v924_v46  ;;  %v2395_v54 = vmul.f32 %v2300_v8, %v924_v46  ;;  %v2398_v55 = vmul.f32 %v2313_v14, %v924_v46  ;;  %v1964_v58 = vpop.f32.mrb[10].mxu0  ;;  %v2405_v63 = vmul.f32 %v2375_v41, %v924_v46 }
 0x106   : > { %v1071_v59 = vmul.f32 %v2350_v28, %v990_v51  ;;  %v988_v60 = vsel %vm962_vm9, %v964_v52, 0.0  ;;  %v967_v61 = vld [vmem:[#allocation2 + $0x2f] sm:$0xff]  ;;  %v922_v0 = vsel %vm2379_vm2, %v840_v47, 0.0  ;;  %v2409_v1 = vpop.f32.mrb[11].mxu0  ;;  %v2412_v2 = vmul.f32 %v2355_v29, %v990_v51 }
 0x107   : > { %v1013_v62 = vld [vmem:[#allocation2 + $0x31] sm:$0xff]  ;;  %3177 = vst [vmem:[#allocation7_spill] sm:$0xff] %v2405_v63  ;;  %v1069_v3 = vmul.f32 %v2350_v28, %v988_v60  ;;  %v1072_v5 = vmul.f32 %v2350_v28, %v967_v61  ;;  %943 = vst.msk [vmem:[#allocation2 + $0x48] sm:$0xff] %vm938_vm8, %v922_v0  ;;  %v2419_v9 = vld [vmem:[#allocation2 + $0x29] sm:$0xff]  ;;  %v1168_v12 = vmul.f32 %v2355_v29, %v967_v61  ;;  %v843_v45 = vmin.f32 %v823_v48, 6.0 }
 0x108   : > { %3178 = vst [vmem:[#allocation8_spill] sm:$0xff] %v2412_v2  ;;  %v1037_v4 = vsel %vm1009_vm14, %v1013_v62, 0.0  ;;  %v965_v6 = vld [vmem:[#allocation2 + $0xf] sm:$0xff]  ;;  %v1109_v10 = vadd.f32 %v1093_v23, %v1071_v59  ;;  %v1095_v31 = vmul.f32 %v2300_v8, %v922_v0  ;;  %v1131_v23 = vmul.f32 %v2365_v35, %v2419_v9 }
 0x109   : > { %v1011_v7 = vld [vmem:[#allocation2 + $0x11] sm:$0xff]  ;;  %v1132_v11 = vmul.f32 %v2365_v35, %v1037_v4  ;;  %v1110_v16 = vadd.f32 %v1094_v37, %v1072_v5  ;;  %v2428_v19 = vmul.f32 %v2391_v53, %v1037_v4  ;;  %v1070_v20 = vmul.f32 %v2350_v28, %v965_v6  ;;  %v2441_v37 = vld [vmem:[%s3145_s6 + $0x6] ss:$0 sm:$0xff] }
 0x10a   : > { %v1035_v15 = vsel %vm1009_vm14, %v1011_v7, 0.0  ;;  %v2432_v25 = vadd.f32 %v1091_v34, %v1069_v3  ;;  %v1207_v32 = vmul.f32 %v2313_v14, %v922_v0  ;;  %v2444_v44 = vmul.f32 %v2375_v41, %v922_v0 }
 0x10b   : > { %v1130_v21 = vmul.f32 %v2365_v35, %v1035_v15  ;;  %v1108_v33 = vadd.f32 %v1092_v39, %v1070_v20  ;;  %v841_v46 = vmin.f32 %v821_v49, 6.0  ;;  %v1967_v34 = vpop.f32.mrb[12].mxu0  ;;  %v2446_v47 = vadd.f32 %v1132_v11, %v1110_v16 }
 0x10c   : > { %3179 = vst [vmem:[#allocation9_spill] sm:$0xff] %v2444_v44  ;;  %v970_v51 = vld [vmem:[#allocation2 + $0x67] sm:$0xff]  ;;  %v1147_v52 = vadd.f32 %v1131_v23, %v1109_v10  ;;  %v806_v59 = vadd.f32 %v2259_v40, %v779_v56  ;;  %v777_v60 = vmul.f32 %v2253_v36, %v715_v50  ;;  %v731_v39 = vpop.f32.mrb[13].mxu0  ;;  %v925_v48 = vsel %vm2334_vm0, %v843_v45, 0.0  ;;  %vm2638_vm0 = vmand %vm875_vm11, %vm885_vm12 }
 0x10d   : > { %v1146_v61 = vadd.f32 %v1130_v21, %v1108_v33  ;;  %v994_v62 = vsel %vm962_vm9, %v970_v51, 0.0  ;;  %v923_v49 = vsel %vm2379_vm2, %v841_v46, 0.0  ;;  %v1968_v0 = vpop.f32.mrb[14].mxu0  ;;  %946 = vst.msk [vmem:[#allocation2 + $0x70] sm:$0xff] %vm938_vm8, %v925_v48  ;;  %v780_v24 = vmul.f32 %v1964_v58, %v2253_v36  ;;  %vm2656_vm2 = vmand %vm874_vm13, %vm884_vm15 }
 0x10e   : > { %v1075_v56 = vmul.f32 %v2350_v28, %v994_v62  ;;  %v2460_v50 = vmul.f32 %v2355_v29, %v994_v62  ;;  %v2463_v3 = vmul.f32 %v2441_v37, %v994_v62  ;;  %v968_v4 = vld [vmem:[#allocation2 + $0x47] sm:$0xff]  ;;  %944 = vst.msk [vmem:[#allocation2 + $0x50] sm:$0xff] %vm938_vm8, %v923_v49  ;;  %v2468_v5 = vpop.f32.mrb[15].mxu0  ;;  %v1098_v7 = vmul.f32 %v2300_v8, %v925_v48 }
 0x10f   : > { %v1184_v42 = vadd.f32 %v1168_v12, %v1146_v61  ;;  %v2472_v6 = vsel %vm962_vm9, %v968_v4, 0.0  ;;  %v2476_v10 = vmul.f32 %v2313_v14, %v925_v48  ;;  %v2486_v12 = vmul.f32 %v2375_v41, %v925_v48 }
 0x110   : > { %3180 = vst [vmem:[#allocation10_spill] sm:$0xff] %v2463_v3  ;;  %v2479_v11 = vadd.f32 %v2395_v54, %v1075_v56  ;;  %v1073_v15 = vmul.f32 %v2350_v28, %v2472_v6  ;;  %v1169_v58 = vmul.f32 %v2355_v29, %v2472_v6  ;;  %v1096_v20 = vmul.f32 %v2300_v8, %v923_v49 }
 0x111   : > { %3181 = vst [vmem:[#allocation11_spill] sm:$0xff] %v2486_v12  ;;  %v2489_v16 = vadd.f32 %v2369_v38, %v1184_v42  ;;  %v1208_v21 = vmul.f32 %v2313_v14, %v923_v49  ;;  %v826_v23 = vmax.f32 %v806_v59, 0.0  ;;  %v2494_v54 = vmul.f32 %v2375_v41, %v923_v49 }
 0x112   : > { %v1185_v33 = vadd.f32 %v1169_v58, %v1147_v52  ;;  %v804_v38 = vadd.f32 %v2259_v40, %v777_v60  ;;  %v807_v46 = vadd.f32 %v2259_v40, %v780_v24  ;;  %v778_v59 = vmul.f32 %v2253_v36, %v2409_v1 }
 0x113   : > { %3182 = vst [vmem:[#allocation12_spill] sm:$0xff] %v2494_v54  ;;  %v846_v51 = vmin.f32 %v826_v23, 6.0  ;;  %v783_v52 = vmul.f32 %v1967_v34, %v2253_v36  ;;  %v781_v61 = vmul.f32 %v2253_v36, %v731_v39  ;;  %v2510_v62 = vpop.f32.mrb[16].mxu0  ;;  %v1111_v48 = vadd.f32 %v1095_v31, %v1073_v15 }
 0x114   : > { %v2512_v13 = vadd.f32 %v1207_v32, %v1185_v33  ;;  %v824_v49 = vmax.f32 %v804_v38, 0.0  ;;  %v827_v56 = vmax.f32 %v807_v46, 0.0  ;;  %v2514_v4 = vpop.f32.mrb[17].mxu0  ;;  %v971_v60 = vld [vmem:[#allocation2 + $0x6f] sm:$0xff]  ;;  %v805_v34 = vadd.f32 %v2259_v40, %v778_v59 }
 0x115   : > { %v1017_v42 = vld [vmem:[#allocation2 + $0x71] sm:$0xff]  ;;  %v928_v1 = vsel %vm2500_vm7, %v846_v51, 0.0  ;;  %v2522_v39 = vadd.f32 %v2259_v40, %v783_v52  ;;  %v2525_v31 = vmul.f32 %v1968_v0, %v2253_v36  ;;  %v2527_v32 = vpop.f32.mrb[18].mxu0  ;;  %v1076_v58 = vmul.f32 %v2350_v28, %v971_v60  ;;  %v2538_v33 = vld [vmem:[#allocation2 + $0x49] sm:$0xff] }
 0x116   : > { %3185 = vst [vmem:[#allocation13_spill] sm:$0xff] %v2512_v13  ;;  %v2516_v24 = vld [vmem:[#allocation2 + $0x4f] sm:$0xff]  ;;  %v2531_v15 = vsel %vm1009_vm14, %v1017_v42, 0.0  ;;  %v2535_v23 = vmul.f32 %v2355_v29, %v971_v60  ;;  %949 = vst.msk [vmem:[#allocation2 + $0xa8] sm:$0xff] %vm938_vm8, %v928_v1  ;;  %v2543_v0 = vadd.f32 %v2259_v40, %v781_v61  ;;  %v2545_v46 = vpop.f32.mrb[19].mxu0  ;;  %v2550_v59 = vmul.f32 %v2441_v37, %v971_v60 }
 0x117   : > { %3186 = vst [vmem:[#allocation14_spill] sm:$0xff] %v2516_v24  ;;  %3187 = vst [vmem:[#allocation15_spill] sm:$0xff] %v2531_v15  ;;  %v2540_v38 = vld [vmem:[#allocation2 + $0x69] sm:$0xff]  ;;  %v1136_v51 = vmul.f32 %v2365_v35, %v2531_v15  ;;  %v1074_v52 = vmul.f32 %v2350_v28, %v2516_v24  ;;  %v1170_v42 = vmul.f32 %v2355_v29, %v2516_v24  ;;  %v1015_v30 = vld [vmem:[#allocation2 + $0x51] sm:$0xff] }
 0x118   : > { %3188 = vst [vmem:[#allocation16_spill] sm:$0xff] %v2538_v33  ;;  %3189 = vst [vmem:[#allocation17_spill] sm:$0xff] %v2540_v38  ;;  %v1114_v12 = vadd.f32 %v1098_v7, %v1076_v58  ;;  %v1101_v63 = vmul.f32 %v2300_v8, %v928_v1  ;;  %v2566_v60 = vmul.f32 %v2313_v14, %v928_v1 }
 0x119   : > { %3190 = vst [vmem:[#allocation18_spill] sm:$0xff] %v2550_v59  ;;  %v844_v59 = vmin.f32 %v824_v49, 6.0  ;;  %v1186_v3 = vadd.f32 %v1170_v42, %v2446_v47  ;;  %v2572_v44 = vmul.f32 %v2375_v41, %v928_v1  ;;  %v1133_v17 = vmul.f32 %v2365_v35, %v2538_v33 }
 0x11a   : > { %v1135_v7 = vmul.f32 %v2365_v35, %v2540_v38  ;;  %v2580_v49 = vadd.f32 %v1136_v51, %v1114_v12  ;;  %v1112_v58 = vadd.f32 %v1096_v20, %v1074_v52  ;;  %v847_v47 = vmin.f32 %v827_v56, 6.0 }
 0x11b   : > { %3193 = vst [vmem:[#allocation19_spill] sm:$0xff] %v2572_v44  ;;  %v926_v13 = vsel %vm2560_vm10, %v844_v59, 0.0  ;;  %v2584_v42 = vadd.f32 %v1208_v21, %v1186_v3  ;;  %v1149_v44 = vadd.f32 %v1133_v17, %v1111_v48  ;;  %v1247_v54 = vmul.f32 %v2391_v53, %v2540_v38 }
 0x11c   : > { %947 = vst.msk [vmem:[#allocation2 + $0x88] sm:$0xff] %vm938_vm8, %v926_v13  ;;  %v1099_v1 = vmul.f32 %v2300_v8, %v926_v13  ;;  %v1151_v2 = vadd.f32 %v1135_v7, %v2479_v11  ;;  %v1211_v12 = vmul.f32 %v2313_v14, %v926_v13  ;;  %v929_v20 = vsel %vm2500_vm7, %v847_v47, 0.0  ;;  %vm2781_vm7 = vmand %vm877_vm3, %vm887_vm4 }
 0x11d   : > { %3194 = vst [vmem:[#allocation20_spill] sm:$0xff] %v2584_v42  ;;  %v825_v51 = vmax.f32 %v805_v34, 0.0  ;;  %v974_v56 = vld [vmem:[#allocation2 + $0xa7] sm:$0xff]  ;;  %v1187_v3 = vadd.f32 %v2460_v50, %v1149_v44  ;;  %v1323_v21 = vmul.f32 %v2375_v41, %v926_v13  ;;  %950 = vst.msk [vmem:[#allocation2 + $0xb0] sm:$0xff] %vm938_vm8, %v929_v20  ;;  %v1102_v48 = vmul.f32 %v2300_v8, %v929_v20 }
 0x11e   : > { %v2599_v59 = vmul.f32 %v2313_v14, %v929_v20  ;;  %v998_v11 = vsel %vm962_vm9, %v974_v56, 0.0  ;;  %v2604_v52 = vmul.f32 %v2375_v41, %v929_v20  ;;  %v2608_v34 = vsel %vm1009_vm14, %v1015_v30, 0.0 }
 0x11f   : > { %v845_v45 = vmin.f32 %v825_v51, 6.0  ;;  %3196 = vst [vmem:[#allocation22_spill] sm:$0xff] %v2608_v34  ;;  %v1079_v44 = vmul.f32 %v2350_v28, %v998_v11  ;;  %v2612_v50 = vmul.f32 %v2355_v29, %v998_v11  ;;  %v1225_v13 = vadd.f32 %v2398_v55, %v1187_v3 }
 0x120   : > { %3195 = vst [vmem:[#allocation21_spill] sm:$0xff] %v2604_v52  ;;  %v1248_v17 = vmul.f32 %v2391_v53, %v2531_v15  ;;  %v1134_v47 = vmul.f32 %v2365_v35, %v2608_v34  ;;  %v830_v20 = vmax.f32 %v2522_v39, 0.0  ;;  %v828_v30 = vmax.f32 %v2543_v0, 0.0 }
 0x121   : > { %v927_v7 = vsel %vm2560_vm10, %v845_v45, 0.0  ;;  %v2623_v51 = vadd.f32 %v1101_v63, %v1079_v44  ;;  %v2626_v56 = vmul.f32 %v2441_v37, %v998_v11  ;;  %v1263_v52 = vadd.f32 %v1247_v54, %v1225_v13  ;;  %vm2812_vm10 = vmand %vm876_vm5, %vm886_vm6 }
 0x122   : > { %948 = vst.msk [vmem:[#allocation2 + $0x90] sm:$0xff] %vm938_vm8, %v927_v7  ;;  %v1100_v55 = vmul.f32 %v2300_v8, %v927_v7  ;;  %v1150_v61 = vadd.f32 %v1134_v47, %v1112_v58  ;;  %v1212_v45 = vmul.f32 %v2313_v14, %v927_v7  ;;  %v1324_v15 = vmul.f32 %v2375_v41, %v927_v7 }
 0x123   : > { %3197 = vst [vmem:[#allocation23_spill] sm:$0xff] %v2626_v56  ;;  %v972_v3 = vld [vmem:[#allocation2 + $0x87] sm:$0xff]  ;;  %v850_v42 = vmin.f32 %v830_v20, 6.0  ;;  %v848_v54 = vmin.f32 %v828_v30, 6.0  ;;  %v2644_v0 = vadd.f32 %v2259_v40, %v2525_v31  ;;  %v782_v58 = vmul.f32 %v2253_v36, %v2468_v5 }
 0x124   : > { %v996_v39 = vsel %vm962_vm9, %v972_v3, 0.0  ;;  %v975_v7 = vld [vmem:[#allocation2 + $0xaf] sm:$0xff]  ;;  %v1188_v47 = vadd.f32 %v2535_v23, %v1150_v61  ;;  %v2668_v3 = vmul.f32 %v2510_v62, %v2253_v36  ;;  %v2794_v26 = vmul.f32 %v2391_v53, %v2419_v9 }
 0x125   : > { %v1077_v11 = vmul.f32 %v2350_v28, %v996_v39  ;;  %v1173_v44 = vmul.f32 %v2355_v29, %v996_v39  ;;  %v1285_v13 = vmul.f32 %v2441_v37, %v996_v39  ;;  %v1021_v18 = vld [vmem:[#allocation2 + $0xb1] sm:$0xff]  ;;  %v1080_v20 = vmul.f32 %v2350_v28, %v975_v7 }
 0x126   : > { %v2662_v5 = vsel %vm1009_vm14, %v1021_v18, 0.0  ;;  %v1176_v30 = vmul.f32 %v2355_v29, %v975_v7  ;;  %v1288_v39 = vmul.f32 %v2441_v37, %v975_v7  ;;  %v1226_v38 = vadd.f32 %v2476_v10, %v1188_v47 }
 0x127   : > { %v1189_v23 = vadd.f32 %v1173_v44, %v1151_v2  ;;  %v1301_v61 = vadd.f32 %v1285_v13, %v1263_v52  ;;  %v1140_v22 = vmul.f32 %v2365_v35, %v2662_v5  ;;  %v1118_v56 = vadd.f32 %v1102_v48, %v1080_v20 }
 0x128   : > { %v932_v18 = vsel %vm2638_vm0, %v850_v42, 0.0  ;;  %v930_v34 = vsel %vm2656_vm2, %v848_v54, 0.0  ;;  %v1115_v33 = vadd.f32 %v1099_v1, %v1077_v11  ;;  %v2701_v11 = vld [vmem:[%s3145_s6 + $0x8] ss:$0 sm:$0xff]  ;;  %v1264_v7 = vadd.f32 %v1248_v17, %v1226_v38 }
 0x129   : > { %v2678_v24 = vadd.f32 %v1211_v12, %v1189_v23  ;;  %v2680_v62 = vadd.f32 %v1323_v21, %v1301_v61  ;;  %v973_v2 = vld [vmem:[#allocation2 + $0x8f] sm:$0xff]  ;;  %953 = vst.msk [vmem:[#allocation2 + $0xe8] sm:$0xff] %vm938_vm8, %v932_v18  ;;  %v1105_v44 = vmul.f32 %v2300_v8, %v932_v18  ;;  %951 = vst.msk [vmem:[#allocation2 + $0xc8] sm:$0xff] %vm938_vm8, %v930_v34 }
 0x12a   : > { %v1019_v52 = vld [vmem:[#allocation2 + $0x91] sm:$0xff]  ;;  %v1078_v42 = vmul.f32 %v2350_v28, %v973_v2  ;;  %v1174_v48 = vmul.f32 %v2355_v29, %v973_v2  ;;  %v2690_v1 = vmul.f32 %v2313_v14, %v932_v18  ;;  %v2692_v12 = vld [vmem:[#allocation2 + $0x89] sm:$0xff]  ;;  %v2696_v54 = vadd.f32 %v1140_v22, %v1118_v56 }
 0x12b   : > { %3202 = vst [vmem:[#allocation24_spill] sm:$0xff] %v2678_v24  ;;  %3203 = vst [vmem:[#allocation25_spill] sm:$0xff] %v2680_v62  ;;  %v1043_v10 = vsel %vm1009_vm14, %v1019_v52, 0.0  ;;  %v2694_v21 = vld [vmem:[#allocation2 + $0xa9] sm:$0xff]  ;;  %v1286_v47 = vmul.f32 %v2441_v37, %v973_v2  ;;  %v2709_v56 = vmul.f32 %v2375_v41, %v932_v18  ;;  %v1137_v22 = vmul.f32 %v2365_v35, %v2692_v12 }
 0x12c   : > { %v1138_v13 = vmul.f32 %v2365_v35, %v1043_v10  ;;  %v1116_v20 = vadd.f32 %v1100_v55, %v1078_v42  ;;  %v1190_v23 = vadd.f32 %v1174_v48, %v2580_v49  ;;  %v1250_v61 = vmul.f32 %v2391_v53, %v1043_v10 }
 0x12d   : > { %v1362_v52 = vmul.f32 %v2701_v11, %v1043_v10  ;;  %v1302_v24 = vadd.f32 %v1286_v47, %v1264_v7  ;;  %3204 = vst [vmem:[#allocation26_spill] sm:$0xff] %v2709_v56  ;;  %v1139_v62 = vmul.f32 %v2365_v35, %v2694_v21  ;;  %v1103_v55 = vmul.f32 %v2300_v8, %v930_v34 }
 0x12e   : > { %v1154_v38 = vadd.f32 %v1138_v13, %v1116_v20  ;;  %v1228_v17 = vadd.f32 %v1212_v45, %v1190_v23  ;;  %v1215_v49 = vmul.f32 %v2313_v14, %v930_v34  ;;  %v1153_v10 = vadd.f32 %v1137_v22, %v1115_v33 }
 0x12f   : > { %v1340_v2 = vadd.f32 %v1324_v15, %v1302_v24  ;;  %v1155_v18 = vadd.f32 %v1139_v62, %v2623_v51  ;;  %v1251_v42 = vmul.f32 %v2391_v53, %v2694_v21  ;;  %v831_v45 = vmax.f32 %v2644_v0, 0.0 }
 0x130   : > { %v1192_v48 = vadd.f32 %v1176_v30, %v1154_v38  ;;  %v1266_v7 = vadd.f32 %v1250_v61, %v1228_v17  ;;  %v978_v47 = vld [vmem:[#allocation2 + $0xe7] sm:$0xff]  ;;  %v809_v20 = vadd.f32 %v2259_v40, %v782_v58  ;;  %v1191_v15 = vadd.f32 %v2612_v50, %v1153_v10 }
 0x131   : > { %v976_v13 = vld [vmem:[#allocation2 + $0xc7] sm:$0xff]  ;;  %v1002_v23 = vsel %vm962_vm9, %v978_v47, 0.0  ;;  %v1327_v33 = vmul.f32 %v2375_v41, %v930_v34  ;;  %v2732_v30 = vadd.f32 %v1362_v52, %v1340_v2  ;;  %v851_v52 = vmin.f32 %v831_v45, 6.0 }
 0x132   : > { %v1000_v24 = vsel %vm962_vm9, %v976_v13, 0.0  ;;  %v2730_v51 = vadd.f32 %v1288_v39, %v1266_v7  ;;  %v1083_v62 = vmul.f32 %v2350_v28, %v1002_v23  ;;  %v2736_v0 = vmul.f32 %v2355_v29, %v1002_v23 }
 0x133   : > { %v2741_v58 = vmul.f32 %v2441_v37, %v1002_v23  ;;  %v1081_v50 = vmul.f32 %v2350_v28, %v1000_v24  ;;  %v1177_v34 = vmul.f32 %v2355_v29, %v1000_v24  ;;  %v1229_v39 = vadd.f32 %v2566_v60, %v1191_v15 }
 0x134   : > { %v1289_v61 = vmul.f32 %v2441_v37, %v1000_v24  ;;  %v829_v22 = vmax.f32 %v809_v20, 0.0  ;;  %v1230_v38 = vadd.f32 %v2599_v59, %v1192_v48  ;;  %v2748_v17 = vadd.f32 %v1105_v44, %v1083_v62 }
 0x135   : > { %3205 = vst [vmem:[#allocation27_spill] sm:$0xff] %v2741_v58  ;;  %v2750_v2 = vadd.f32 %v1103_v55, %v1081_v50  ;;  %v1193_v10 = vadd.f32 %v1177_v34, %v1155_v18  ;;  %v1267_v7 = vadd.f32 %v1251_v42, %v1229_v39  ;;  %v933_v47 = vsel %vm2638_vm0, %v851_v52, 0.0 }
 0x136   : > { %v849_v13 = vmin.f32 %v829_v22, 6.0  ;;  %v814_v23 = vadd.f32 %v2259_v40, %v2668_v3  ;;  %v785_v60 = vmul.f32 %v2253_v36, %v2514_v4  ;;  %954 = vst.msk [vmem:[#allocation2 + $0xf0] sm:$0xff] %vm938_vm8, %v933_v47  ;;  %v1106_v59 = vmul.f32 %v2300_v8, %v933_v47  ;;  %v3215_v22 = vld [vmem:[#allocation16_spill] sm:$0xff] }
 0x137   : > { %v2758_v45 = vadd.f32 %v1215_v49, %v1193_v10  ;;  %v1305_v20 = vadd.f32 %v1289_v61, %v1267_v7  ;;  %v1252_v44 = vmul.f32 %v2391_v53, %v2662_v5  ;;  %v2765_v63 = vmul.f32 %v2313_v14, %v933_v47  ;;  %v1010_v49 = vld [vmem:[#allocation2 + $0x9] sm:$0xff] }
 0x138   : > { %v2768_v55 = vmul.f32 %v2375_v41, %v933_v47  ;;  %v931_v3 = vsel %vm2656_vm2, %v849_v13, 0.0  ;;  %v834_v4 = vmax.f32 %v814_v23, 0.0  ;;  %v812_v62 = vadd.f32 %v2259_v40, %v785_v60 }
 0x139   : > { %3206 = vst [vmem:[#allocation28_spill] sm:$0xff] %v2758_v45  ;;  %v2772_v18 = vadd.f32 %v1327_v33, %v1305_v20  ;;  %952 = vst.msk [vmem:[#allocation2 + $0xd0] sm:$0xff] %vm938_vm8, %v931_v3  ;;  %v1104_v42 = vmul.f32 %v2300_v8, %v931_v3  ;;  %v1216_v48 = vmul.f32 %v2313_v14, %v931_v3 }
 0x13a   : > { %3207 = vst [vmem:[#allocation29_spill] sm:$0xff] %v2768_v55  ;;  %v1268_v24 = vadd.f32 %v1252_v44, %v1230_v38  ;;  %v854_v31 = vmin.f32 %v834_v4, 6.0  ;;  %v788_v33 = vmul.f32 %v2527_v32, %v2253_v36  ;;  %v786_v8 = vmul.f32 %v2253_v36, %v2545_v46  ;;  %v3214_v46 = vld [vmem:[#allocation14_spill] sm:$0xff] }
 0x13b   : > { %3208 = vst [vmem:[#allocation30_spill] sm:$0xff] %v2772_v18  ;;  %v1328_v50 = vmul.f32 %v2375_v41, %v931_v3  ;;  %v1129_v34 = vmul.f32 %v2365_v35, %v1010_v49  ;;  %v2798_v39 = vadd.f32 %v2428_v19, %v2489_v16  ;;  %v832_v32 = vmax.f32 %v812_v62, 0.0 }
 0x13c   : > { %v2802_v61 = vsel %vm2781_vm7, %v854_v31, 0.0  ;;  %v815_v52 = vadd.f32 %v2259_v40, %v788_v33  ;;  %v813_v36 = vadd.f32 %v2259_v40, %v786_v8  ;;  %v2819_v16 = vmul.f32 %v2441_v37, %v2472_v6 }
 0x13d   : > { %3211 = vst [vmem:[#allocation31_spill] sm:$0xff] %v2802_v61  ;;  %957 = vst.msk [vmem:[#allocation2 + $0x128] sm:$0xff] %vm938_vm8, %v2802_v61  ;;  %v1145_v19 = vadd.f32 %v1129_v34, %v2432_v25  ;;  %v2823_v40 = vmul.f32 %v2441_v37, %v3214_v46  ;;  %v2827_v38 = vmul.f32 %v2701_v11, %v3215_v22  ;;  %v979_v10 = vld [vmem:[#allocation2 + $0xef] sm:$0xff]  ;;  %v852_v7 = vmin.f32 %v832_v32, 6.0  ;;  %v3217_v25 = vld [vmem:[#allocation22_spill] sm:$0xff] }
 0x13e   : > { %v1025_v27 = vld [vmem:[#allocation2 + $0xf1] sm:$0xff]  ;;  %v2829_v47 = vld [vmem:[#allocation2 + $0xe9] sm:$0xff]  ;;  %v835_v13 = vmax.f32 %v815_v52, 0.0  ;;  %v833_v23 = vmax.f32 %v813_v36, 0.0  ;;  %v2833_v60 = vmul.f32 %v2701_v11, %v3217_v25  ;;  %v1084_v20 = vmul.f32 %v2350_v28, %v979_v10 }
 0x13f   : > { %3216 = vst [vmem:[#allocation14_spill] sm:$0xff] %v2829_v47  ;;  %v2837_v6 = vsel %vm1009_vm14, %v1025_v27, 0.0  ;;  %v1180_v44 = vmul.f32 %v2355_v29, %v979_v10  ;;  %v1292_v3 = vmul.f32 %v2441_v37, %v979_v10  ;;  %v934_v62 = vsel %vm2812_vm10, %v852_v7, 0.0 }
 0x140   : > { %v1144_v4 = vmul.f32 %v2365_v35, %v2837_v6  ;;  %v977_v49 = vld [vmem:[#allocation2 + $0xcf] sm:$0xff]  ;;  %v1143_v8 = vmul.f32 %v2365_v35, %v2829_v47  ;;  %v1255_v34 = vmul.f32 %v2391_v53, %v2829_v47  ;;  %v1122_v32 = vadd.f32 %v1106_v59, %v1084_v20  ;;  %955 = vst.msk [vmem:[#allocation2 + $0x108] sm:$0xff] %vm938_vm8, %v934_v62 }
 0x141   : > { %v1023_v31 = vld [vmem:[#allocation2 + $0xd1] sm:$0xff]  ;;  %v2846_v33 = vld [vmem:[#allocation2 + $0xc9] sm:$0xff]  ;;  %v1082_v36 = vmul.f32 %v2350_v28, %v977_v49  ;;  %v1178_v46 = vmul.f32 %v2355_v29, %v977_v49  ;;  %v1290_v7 = vmul.f32 %v2441_v37, %v977_v49  ;;  %v1219_v45 = vmul.f32 %v2313_v14, %v934_v62 }
 0x142   : > { %v1047_v52 = vsel %vm1009_vm14, %v1023_v31, 0.0  ;;  %v2861_v56 = vadd.f32 %v1144_v4, %v1122_v32  ;;  %v1141_v28 = vmul.f32 %v2365_v35, %v2846_v33  ;;  %v1159_v58 = vadd.f32 %v1143_v8, %v2748_v17 }
 0x143   : > { %v1142_v10 = vmul.f32 %v2365_v35, %v1047_v52  ;;  %v1254_v27 = vmul.f32 %v2391_v53, %v1047_v52  ;;  %v1366_v61 = vmul.f32 %v2701_v11, %v1047_v52  ;;  %v1120_v59 = vadd.f32 %v1104_v42, %v1082_v36  ;;  %v3218_v42 = vld [vmem:[#allocation8_spill] sm:$0xff] }
 0x144   : > { %v1194_v20 = vadd.f32 %v1178_v46, %v2696_v54  ;;  %v1306_v31 = vadd.f32 %v1290_v7, %v1268_v24  ;;  %v1331_v47 = vmul.f32 %v2375_v41, %v934_v62  ;;  %v1157_v49 = vadd.f32 %v1141_v28, %v2750_v2 }
 0x145   : > { %v1158_v55 = vadd.f32 %v1142_v10, %v1120_v59  ;;  %v855_v52 = vmin.f32 %v835_v13, 6.0  ;;  %v853_v32 = vmin.f32 %v833_v23, 6.0  ;;  %v1256_v54 = vmul.f32 %v2391_v53, %v2837_v6  ;;  %v3219_v13 = vld [vmem:[#allocation6_spill] sm:$0xff]  ;;  %v3220_v59 = vld [vmem:[#allocation17_spill] sm:$0xff] }
 0x146   : > { %v1232_v18 = vadd.f32 %v1216_v48, %v1194_v20  ;;  %v1344_v4 = vadd.f32 %v1328_v50, %v1306_v31  ;;  %v1183_v36 = vadd.f32 %v3218_v42, %v1145_v19  ;;  %v1195_v17 = vadd.f32 %v2736_v0, %v1157_v49 }
 0x147   : > { %v1196_v35 = vadd.f32 %v1180_v44, %v1158_v55  ;;  %v937_v8 = vsel %vm2781_vm7, %v855_v52, 0.0  ;;  %v980_v48 = vld [vmem:[#allocation2 + $0x107] sm:$0xff]  ;;  %v935_v50 = vsel %vm2812_vm10, %v853_v32, 0.0  ;;  %v1298_v10 = vadd.f32 %v2823_v40, %v2798_v39  ;;  %v3223_v39 = vld [vmem:[#allocation20_spill] sm:$0xff] }
 0x148   : > { %v1270_v24 = vadd.f32 %v1254_v27, %v1232_v18  ;;  %v2876_v62 = vadd.f32 %v1366_v61, %v1344_v4  ;;  %958 = vst.msk [vmem:[#allocation2 + $0x130] sm:$0xff] %vm938_vm8, %v937_v8  ;;  %v2880_v2 = vmul.f32 %v2375_v41, %v937_v8  ;;  %v1221_v19 = vadd.f32 %v3219_v13, %v1183_v36  ;;  %v3226_v36 = vld [vmem:[#allocation10_spill] sm:$0xff] }
 0x149   : > { %v1004_v0 = vsel %vm962_vm9, %v980_v48, 0.0  ;;  %v1233_v18 = vadd.f32 %v2690_v1, %v1195_v17  ;;  %956 = vst.msk [vmem:[#allocation2 + $0x110] sm:$0xff] %vm938_vm8, %v935_v50  ;;  %v1220_v15 = vmul.f32 %v2313_v14, %v935_v50  ;;  %v1234_v9 = vadd.f32 %v2765_v63, %v1196_v35  ;;  %v3227_v48 = vld [vmem:[#allocation18_spill] sm:$0xff] }
 0x14a   : > { %v2885_v55 = vadd.f32 %v1292_v3, %v1270_v24  ;;  %v1181_v61 = vmul.f32 %v2355_v29, %v1004_v0  ;;  %v1293_v23 = vmul.f32 %v2441_v37, %v1004_v0  ;;  %v1332_v44 = vmul.f32 %v2375_v41, %v935_v50 }
 0x14b   : > { %v1271_v46 = vadd.f32 %v1255_v34, %v1233_v18  ;;  %v1259_v3 = vadd.f32 %v2794_v26, %v1221_v19  ;;  %v1245_v1 = vmul.f32 %v2391_v53, %v3215_v22  ;;  %v1272_v7 = vadd.f32 %v1256_v54, %v1234_v9  ;;  %v3221_v34 = vld [vmem:[#allocation12_spill] sm:$0xff]  ;;  %v3222_v26 = vld [vmem:[#allocation13_spill] sm:$0xff]  ;;  %v3224_v22 = vld [vmem:[#allocation15_spill] sm:$0xff] }
 0x14c   : > { %v1197_v27 = vadd.f32 %v1181_v61, %v1159_v58  ;;  %v1246_v14 = vmul.f32 %v2391_v53, %v3217_v25  ;;  %v1359_v20 = vmul.f32 %v2701_v11, %v3220_v59  ;;  %v1336_v31 = vadd.f32 %v3221_v34, %v1298_v10  ;;  %v3225_v54 = vld [vmem:[#allocation9_spill] sm:$0xff] }
 0x14d   : > { %v1309_v63 = vadd.f32 %v1293_v23, %v1271_v46  ;;  %v1297_v28 = vadd.f32 %v2819_v16, %v1259_v3  ;;  %v1261_v49 = vadd.f32 %v1245_v1, %v3222_v26  ;;  %v1360_v58 = vmul.f32 %v2701_v11, %v3224_v22  ;;  %v2938_v23 = vld [vmem:[%s3147_s8] ss:$0 sm:$0xff]  ;;  %v3229_v3 = vld [vmem:[#allocation7_spill] sm:$0xff] }
 0x14e   : > { %v2908_v52 = vadd.f32 %v1219_v45, %v1197_v27  ;;  %v1262_v40 = vadd.f32 %v1246_v14, %v3223_v39  ;;  %v1361_v25 = vmul.f32 %v2701_v11, %v2692_v12  ;;  %v1374_v16 = vadd.f32 %v2833_v60, %v1336_v31  ;;  %v2922_v45 = vld [vmem:[%s3146_s7] ss:$0 sm:$0xff]  ;;  %v3230_v14 = vld [vmem:[#allocation11_spill] sm:$0xff] }
 0x14f   : > { %v2915_v4 = vadd.f32 %v1331_v47, %v1309_v63  ;;  %v983_v32 = vld [vmem:[#allocation2 + $0x12f] sm:$0xff]  ;;  %v1335_v42 = vadd.f32 %v3225_v54, %v1297_v28  ;;  %v1299_v35 = vadd.f32 %v3226_v36, %v1261_v49  ;;  %v3228_v47 = vld [vmem:[#allocation25_spill] sm:$0xff]  ;;  %v1401_v19 = vmul.f32 %v2922_v45, %v2732_v30 }
 0x150   : > { %v981_v24 = vld [vmem:[#allocation2 + $0x10f] sm:$0xff]  ;;  %v1296_v8 = vmul.f32 %v2441_v37, %v983_v32  ;;  %v1300_v50 = vadd.f32 %v3227_v48, %v1262_v40  ;;  %v1377_v13 = vadd.f32 %v1361_v25, %v3228_v47  ;;  %v1397_v30 = vmul.f32 %v2922_v45, %v1374_v16 }
 0x151   : > { %v1027_v17 = vld [vmem:[#allocation2 + $0x111] sm:$0xff]  ;;  %v1182_v0 = vmul.f32 %v2355_v29, %v981_v24  ;;  %v1294_v18 = vmul.f32 %v2441_v37, %v981_v24  ;;  %v1373_v61 = vadd.f32 %v2827_v38, %v1335_v42  ;;  %v1337_v10 = vadd.f32 %v3229_v3, %v1299_v35 }
 0x152   : > { %v1051_v60 = vsel %vm1009_vm14, %v1027_v17, 0.0  ;;  %v1338_v38 = vadd.f32 %v3230_v14, %v1300_v50  ;;  %v1420_v59 = vadd.f32 %v2938_v23, %v1397_v30  ;;  %v1400_v28 = vmul.f32 %v2922_v45, %v1377_v13  ;;  %v3231_v50 = vld [vmem:[#allocation21_spill] sm:$0xff]  ;;  %v3233_v30 = vld [vmem:[#allocation23_spill] sm:$0xff] }
 0x153   : > { %v1258_v9 = vmul.f32 %v2391_v53, %v1051_v60  ;;  %v1370_v46 = vmul.f32 %v2701_v11, %v1051_v60  ;;  %v1198_v1 = vadd.f32 %v1182_v0, %v2861_v56  ;;  %v1310_v29 = vadd.f32 %v1294_v18, %v1272_v7 }
 0x154   : > { %v1396_v27 = vmul.f32 %v2922_v45, %v1373_v61  ;;  %v1375_v63 = vadd.f32 %v1359_v20, %v1337_v10  ;;  %v1424_v34 = vadd.f32 %v2938_v23, %v1401_v19  ;;  %v1376_v39 = vadd.f32 %v1360_v58, %v1338_v38  ;;  %v1026_v10 = vld [vmem:[#allocation2 + $0x109] sm:$0xff]  ;;  %v3236_v38 = vld [vmem:[#allocation14_spill] sm:$0xff] }
 0x155   : > { %v1236_v31 = vadd.f32 %v1220_v15, %v1198_v1  ;;  %v1348_v26 = vadd.f32 %v1332_v44, %v1310_v29  ;;  %v1436_v40 = vmax.f32 %v1420_v59, 0.0  ;;  %v1423_v7 = vadd.f32 %v2938_v23, %v1400_v28  ;;  %v3234_v29 = vld [vmem:[#allocation30_spill] sm:$0xff]  ;;  %v3237_v28 = vld [vmem:[#allocation19_spill] sm:$0xff] }
 0x156   : > { %v1419_v49 = vadd.f32 %v2938_v23, %v1396_v27  ;;  %v1398_v56 = vmul.f32 %v2922_v45, %v1375_v63  ;;  %v1440_v22 = vmax.f32 %v1424_v34, 0.0  ;;  %v1399_v20 = vmul.f32 %v2922_v45, %v1376_v39 }
 0x157   : > { %v1274_v25 = vadd.f32 %v1258_v9, %v1236_v31  ;;  %v1386_v32 = vadd.f32 %v1370_v46, %v1348_v26  ;;  %v1452_v42 = vmin.f32 %v1436_v40, 6.0  ;;  %v1439_v36 = vmax.f32 %v1423_v7, 0.0  ;;  %v3238_v26 = vld [vmem:[#allocation28_spill] sm:$0xff]  ;;  %v3239_v7 = vld [vmem:[#allocation27_spill] sm:$0xff] }
 0x158   : > { %v1435_v54 = vmax.f32 %v1419_v49, 0.0  ;;  %v1421_v16 = vadd.f32 %v2938_v23, %v1398_v56  ;;  %v1456_v15 = vmin.f32 %v1440_v22, 6.0  ;;  %v1422_v58 = vadd.f32 %v2938_v23, %v1399_v20 }
 0x159   : > { %v1312_v44 = vadd.f32 %v1296_v8, %v1274_v25  ;;  %v1249_v24 = vmul.f32 %v2391_v53, %v2692_v12  ;;  %v1455_v48 = vmin.f32 %v1439_v36, 6.0  ;;  %v1342_v47 = vadd.f32 %v3231_v50, %v2730_v51  ;;  %v3232_v8 = vld [vmem:[#allocation24_spill] sm:$0xff] }
 0x15a   : > { %v1451_v35 = vmin.f32 %v1435_v54, 6.0  ;;  %v1437_v17 = vmax.f32 %v1421_v16, 0.0  ;;  %v1363_v13 = vmul.f32 %v2701_v11, %v2694_v21  ;;  %v1438_v0 = vmax.f32 %v1422_v58, 0.0  ;;  %v1029_v50 = vld [vmem:[#allocation2 + $0x131] sm:$0xff] }
 0x15b   : > { %v2963_v19 = vadd.f32 %v2880_v2, %v1312_v44  ;;  %v1265_v18 = vadd.f32 %v1249_v24, %v3232_v8  ;;  %v1469_v9 = vpack.c.bf16 %v1456_v15, %v1455_v48  ;;  %v1364_v12 = vmul.f32 %v2701_v11, %v2662_v5  ;;  %v3235_v5 = vld [vmem:[#allocation29_spill] sm:$0xff]  ;;  %v3240_v15 = vld [vmem:[#allocation26_spill] sm:$0xff] }
 0x15c   : > { %v1467_v60 = vpack.c.bf16 %v1452_v42, %v1451_v35  ;;  %v1453_v61 = vmin.f32 %v1437_v17, 6.0  ;;  %v1365_v46 = vmul.f32 %v2701_v11, %v2846_v33  ;;  %v1454_v51 = vmin.f32 %v1438_v0, 6.0 }
 0x15d   : > { %v1303_v21 = vadd.f32 %v3233_v30, %v1265_v18  ;;  %v1405_v2 = vmul.f32 %v2922_v45, %v2876_v62  ;;  %v1253_v3 = vmul.f32 %v2391_v53, %v2846_v33  ;;  %v1380_v1 = vadd.f32 %v1364_v12, %v1342_v47 }
 0x15e   : > { %1977 = vmatprep.mubr.msk.bf16.mxu1 %vm938_vm8, %v1467_v60  ;;  %v1381_v27 = vadd.f32 %v1365_v46, %v3234_v29  ;;  %v1346_v14 = vadd.f32 %v3235_v5, %v2885_v55  ;;  %v1367_v59 = vmul.f32 %v2701_v11, %v3236_v38  ;;  %v1468_v63 = vpack.c.bf16 %v1454_v51, %v1453_v61  ;;  %v3241_v29 = vld [vmem:[#allocation31_spill] sm:$0xff] }
 0x15f   : > { %v1341_v34 = vadd.f32 %v3237_v28, %v1303_v21  ;;  %v1428_v31 = vadd.f32 %v2938_v23, %v1405_v2  ;;  %v1269_v62 = vadd.f32 %v1253_v3, %v3238_v26  ;;  %v1403_v49 = vmul.f32 %v2922_v45, %v1380_v1 }
 0x160   : > { %v1404_v33 = vmul.f32 %v2922_v45, %v1381_v27  ;;  %v1368_v39 = vmul.f32 %v2701_v11, %v2837_v6  ;;  %v1257_v40 = vmul.f32 %v2391_v53, %v1026_v10  ;;  %1978 = vmatmul.mubr.msk.bf16.vlgmr.msra.gmra.mrb[0].mxu1 %vm938_vm8, %v1468_v63  ;;  %v1369_v25 = vmul.f32 %v2701_v11, %v1026_v10  ;;  %v982_v6 = vld [vmem:[#allocation2 + $0x127] sm:$0xff] }
 0x161   : > { %v1379_v55 = vadd.f32 %v1363_v13, %v1341_v34  ;;  %v1444_v56 = vmax.f32 %v1428_v31, 0.0  ;;  %v1307_v22 = vadd.f32 %v3239_v7, %v1269_v62  ;;  %1981 = vmatprep.mubr.msk.bf16.mxu1 %vm938_vm8, %v1469_v9  ;;  %v1426_v54 = vadd.f32 %v2938_v23, %v1403_v49 }
 0x162   : > { %v1427_v20 = vadd.f32 %v2938_v23, %v1404_v33  ;;  %v1384_v42 = vadd.f32 %v1368_v39, %v1346_v14  ;;  %v1409_v16 = vmul.f32 %v2922_v45, %v1386_v32  ;;  %v1385_v35 = vadd.f32 %v1369_v25, %v2915_v4  ;;  %v1028_v14 = vld [vmem:[#allocation2 + $0x129] sm:$0xff] }
 0x163   : > { %v1402_v53 = vmul.f32 %v2922_v45, %v1379_v55  ;;  %v1460_v36 = vmin.f32 %v1444_v56, 6.0  ;;  %v1345_v44 = vadd.f32 %v3240_v15, %v1307_v22  ;;  %v1442_v58 = vmax.f32 %v1426_v54, 0.0 }
 0x164   : > { %v1443_v24 = vmax.f32 %v1427_v20, 0.0  ;;  %v1407_v17 = vmul.f32 %v2922_v45, %v1384_v42  ;;  %v1432_v48 = vadd.f32 %v2938_v23, %v1409_v16  ;;  %v1408_v32 = vmul.f32 %v2922_v45, %v1385_v35  ;;  %v1660_v20 = vld [vmem:[%s2200_s24 + $0x10] sm:$0xff]  ;;  %v1661_v35 = vld [vmem:[%s2200_s24 + $0x18] sm:$0xff] }
 0x165   : > { %v1425_v47 = vadd.f32 %v2938_v23, %v1402_v53  ;;  %v1383_v13 = vadd.f32 %v1367_v59, %v1345_v44  ;;  %v1006_v60 = vsel %vm962_vm9, %v982_v6, 0.0  ;;  %v1458_v0 = vmin.f32 %v1442_v58, 6.0  ;;  %v1658_v53 = vld [vmem:[%s2200_s24] sm:$0xff] }
 0x166   : > { %v1459_v8 = vmin.f32 %v1443_v24, 6.0  ;;  %v1430_v18 = vadd.f32 %v2938_v23, %v1407_v17  ;;  %v1448_v4 = vmax.f32 %v1432_v48, 0.0  ;;  %v1431_v12 = vadd.f32 %v2938_v23, %v1408_v32  ;;  %v1659_v48 = vld [vmem:[%s2200_s24 + $0x8] sm:$0xff] }
 0x167   : > { %v1441_v61 = vmax.f32 %v1425_v47, 0.0  ;;  %v1406_v9 = vmul.f32 %v2922_v45, %v1383_v13  ;;  %v1053_v46 = vsel %vm1009_vm14, %v1029_v50, 0.0  ;;  %v1273_v2 = vadd.f32 %v1257_v40, %v2908_v52 }
 0x168   : > { %v1471_v51 = vpack.c.bf16 %v1460_v36, %v1459_v8  ;;  %v1446_v30 = vmax.f32 %v1430_v18, 0.0  ;;  %v1464_v21 = vmin.f32 %v1448_v4, 6.0  ;;  %v1447_v10 = vmax.f32 %v1431_v12, 0.0  ;;  %v1664_v18 = vld [vmem:[%s2200_s24 + $0x30] sm:$0xff]  ;;  %v1662_v12 = vld [vmem:[%s2200_s24 + $0x20] sm:$0xff] }
 0x169   : > { %v1457_v43 = vmin.f32 %v1441_v61, 6.0  ;;  %v1429_v3 = vadd.f32 %v2938_v23, %v1406_v9  ;;  %v1295_v1 = vmul.f32 %v2441_v37, %v1006_v60  ;;  %v1333_v27 = vmul.f32 %v2375_v41, %v3241_v29 }
 0x16a   : > { %v1462_v5 = vmin.f32 %v1446_v30, 6.0  ;;  %v1372_v38 = vmul.f32 %v2701_v11, %v1053_v46  ;;  %v1463_v63 = vmin.f32 %v1447_v10, 6.0  ;;  %v1371_v37 = vmul.f32 %v2701_v11, %v1028_v14  ;;  %v1663_v10 = vld [vmem:[%s2200_s24 + $0x28] sm:$0xff] }
 0x16b   : > { %v1470_v57 = vpack.c.bf16 %v1458_v0, %v1457_v43  ;;  %v1445_v59 = vmax.f32 %v1429_v3, 0.0  ;;  %v1311_v28 = vadd.f32 %v1295_v1, %v1273_v2 }
 0x16c   : > { %v1388_v34 = vadd.f32 %v1372_v38, %v2963_v19  ;;  %v1473_v31 = vpack.c.bf16 %v1464_v21, %v1463_v63  ;;  %v1665_v21 = vld [vmem:[%s2200_s24 + $0x38] sm:$0xff] }
 0x16d   : > { %1982 = vmatmul.mubr.msk.bf16.gmra.mrb[4].mxu1 %vm938_vm8, %v1470_v57  ;;  %v1461_v52 = vmin.f32 %v1445_v59, 6.0  ;;  %v1349_v26 = vadd.f32 %v1333_v27, %v1311_v28  ;;  %v1668_v59 = vld [vmem:[%s2200_s24 + $0x50] sm:$0xff] }
 0x16e   : > { %1985 = vmatprep.mubr.msk.bf16.mxu1 %vm938_vm8, %v1471_v51  ;;  %v1411_v41 = vmul.f32 %v2922_v45, %v1388_v34 }
 0x16f   : > { %v1472_v62 = vpack.c.bf16 %v1462_v5, %v1461_v52  ;;  %v1387_v49 = vadd.f32 %v1371_v37, %v1349_v26  ;;  %v1666_v52 = vld [vmem:[%s2200_s24 + $0x40] sm:$0xff] }
 0x170   : > { %v1434_v33 = vadd.f32 %v2938_v23, %v1411_v41  ;;  %v1669_v41 = vld [vmem:[%s2200_s24 + $0x58] sm:$0xff] }
 0x171   : > { %v1410_v39 = vmul.f32 %v2922_v45, %v1387_v49  ;;  %v3030_v45 = vld [vmem:[%s3149_s10] ss:$0 sm:$0xff] }
 0x172   : > { %v1450_v40 = vmax.f32 %v1434_v33, 0.0 }
 0x173   : > { %v1433_v19 = vadd.f32 %v2938_v23, %v1410_v39  ;;  %v3035_v23 = vld [vmem:[%s3150_s11] ss:$0 sm:$0xff]  ;;  %v1667_v39 = vld [vmem:[%s2200_s24 + $0x48] sm:$0xff] }
 0x174   : > { %v1466_v56 = vmin.f32 %v1450_v40, 6.0 }
 0x175   : > { %1986 = vmatmul.mubr.msk.bf16.gmra.mrb[8].mxu1 %vm938_vm8, %v1472_v62  ;;  %v1449_v55 = vmax.f32 %v1433_v19, 0.0 }
 0x176   : > { %1989 = vmatprep.mubr.msk.bf16.mxu1 %vm938_vm8, %v1473_v31 }
 0x177   : > { %v1465_v11 = vmin.f32 %v1449_v55, 6.0 }
 0x179   : > { %v1474_v7 = vpack.c.bf16 %v1466_v56, %v1465_v11 }
 0x17d   : > { %1990 = vmatmul.mubr.msk.bf16.gmra.mrb[12].mxu1 %vm938_vm8, %v1474_v7 }
 0x233   : > { %v1979_v22 = vpop.f32.mrb[0].mxu1 }
 0x234   : > { %v1621_v25 = vmul.f32 %v1979_v22, %v3030_v45  ;;  %v1549_v54 = vpop.f32.mrb[1].mxu1 }
 0x235   : > { %v1619_v42 = vmul.f32 %v3030_v45, %v1549_v54  ;;  %v1980_v16 = vpop.f32.mrb[2].mxu1 }
 0x236   : > { %v1644_v6 = vadd.f32 %v3035_v23, %v1621_v25  ;;  %v1622_v36 = vmul.f32 %v1980_v16, %v3030_v45  ;;  %v1552_v15 = vpop.f32.mrb[3].mxu1  ;;  %v1672_v25 = vld [vmem:[%s2200_s24 + $0x70] sm:$0xff]  ;;  %v1670_v16 = vld [vmem:[%s2200_s24 + $0x60] sm:$0xff] }
 0x237   : > { %v1642_v44 = vadd.f32 %v3035_v23, %v1619_v42  ;;  %v1620_v58 = vmul.f32 %v3030_v45, %v1552_v15  ;;  %v1673_v15 = vld [vmem:[%s2200_s24 + $0x78] sm:$0xff] }
 0x238   : > { %v1676_v24 = vadd.f32 %v1660_v20, %v1644_v6  ;;  %v1645_v17 = vadd.f32 %v3035_v23, %v1622_v36 }
 0x239   : > { %v1674_v50 = vadd.f32 %v1658_v53, %v1642_v44  ;;  %v1643_v47 = vadd.f32 %v3035_v23, %v1620_v58 }
 0x23a   : > { %1692 = vst.msk [vmem:[%s3048_s13 + $0x10] sm:$0xff] %vm614_vm1, %v1676_v24  ;;  %v1677_v13 = vadd.f32 %v1661_v35, %v1645_v17  ;;  %v1671_v24 = vld [vmem:[%s2200_s24 + $0x68] sm:$0xff] }
 0x23b   : > { %1690 = vst.msk [vmem:[%s3048_s13] sm:$0xff] %vm614_vm1, %v1674_v50  ;;  %v1675_v32 = vadd.f32 %v1659_v48, %v1643_v47 }
 0x23c   : > { %1693 = vst.msk [vmem:[%s3048_s13 + $0x18] sm:$0xff] %vm614_vm1, %v1677_v13 }
 0x23d   : > { %1691 = vst.msk [vmem:[%s3048_s13 + $0x8] sm:$0xff] %vm614_vm1, %v1675_v32 }
 0x240   : > { %v1983_v60 = vpop.f32.mrb[4].mxu1 }
 0x241   : > { %v1625_v0 = vmul.f32 %v1983_v60, %v3030_v45  ;;  %v1565_v8 = vpop.f32.mrb[5].mxu1 }
 0x242   : > { %v1623_v4 = vmul.f32 %v3030_v45, %v1565_v8  ;;  %v1984_v61 = vpop.f32.mrb[6].mxu1 }
 0x243   : > { %v1648_v9 = vadd.f32 %v3035_v23, %v1625_v0  ;;  %v1626_v46 = vmul.f32 %v1984_v61, %v3030_v45  ;;  %v1568_v51 = vpop.f32.mrb[7].mxu1 }
 0x244   : > { %v1646_v30 = vadd.f32 %v3035_v23, %v1623_v4  ;;  %v1624_v2 = vmul.f32 %v3030_v45, %v1568_v51 }
 0x245   : > { %v1680_v43 = vadd.f32 %v1664_v18, %v1648_v9  ;;  %v1649_v3 = vadd.f32 %v3035_v23, %v1626_v46 }
 0x246   : > { %v1678_v1 = vadd.f32 %v1662_v12, %v1646_v30  ;;  %v1647_v29 = vadd.f32 %v3035_v23, %v1624_v2 }
 0x247   : > { %1696 = vst.msk [vmem:[%s3048_s13 + $0x30] sm:$0xff] %vm614_vm1, %v1680_v43  ;;  %v1681_v27 = vadd.f32 %v1665_v21, %v1649_v3 }
 0x248   : > { %1694 = vst.msk [vmem:[%s3048_s13 + $0x20] sm:$0xff] %vm614_vm1, %v1678_v1  ;;  %v1679_v5 = vadd.f32 %v1663_v10, %v1647_v29  ;;  %v1987_v14 = vpop.f32.mrb[8].mxu1 }
 0x249   : > { %1697 = vst.msk [vmem:[%s3048_s13 + $0x38] sm:$0xff] %vm614_vm1, %v1681_v27  ;;  %v1629_v38 = vmul.f32 %v1987_v14, %v3030_v45  ;;  %v1581_v57 = vpop.f32.mrb[9].mxu1 }
 0x24a   : > { %1695 = vst.msk [vmem:[%s3048_s13 + $0x28] sm:$0xff] %vm614_vm1, %v1679_v5  ;;  %v1627_v63 = vmul.f32 %v3030_v45, %v1581_v57  ;;  %v1988_v28 = vpop.f32.mrb[10].mxu1 }
 0x24b   : > { %v1652_v34 = vadd.f32 %v3035_v23, %v1629_v38  ;;  %v1630_v31 = vmul.f32 %v1988_v28, %v3030_v45  ;;  %v1584_v26 = vpop.f32.mrb[11].mxu1 }
 0x24c   : > { %v1650_v37 = vadd.f32 %v3035_v23, %v1627_v63  ;;  %v1628_v62 = vmul.f32 %v3030_v45, %v1584_v26 }
 0x24d   : > { %v1684_v49 = vadd.f32 %v1668_v59, %v1652_v34  ;;  %v1653_v33 = vadd.f32 %v3035_v23, %v1630_v31 }
 0x24e   : > { %v1682_v40 = vadd.f32 %v1666_v52, %v1650_v37  ;;  %v1651_v19 = vadd.f32 %v3035_v23, %v1628_v62 }
 0x24f   : > { %1700 = vst.msk [vmem:[%s3048_s13 + $0x50] sm:$0xff] %vm614_vm1, %v1684_v49  ;;  %v1685_v55 = vadd.f32 %v1669_v41, %v1653_v33 }
 0x250   : > { %1698 = vst.msk [vmem:[%s3048_s13 + $0x40] sm:$0xff] %vm614_vm1, %v1682_v40  ;;  %v1683_v56 = vadd.f32 %v1667_v39, %v1651_v19  ;;  %v1991_v11 = vpop.f32.mrb[12].mxu1 }
 0x251   : > { %1701 = vst.msk [vmem:[%s3048_s13 + $0x58] sm:$0xff] %vm614_vm1, %v1685_v55  ;;  %v1633_v7 = vmul.f32 %v1991_v11, %v3030_v45  ;;  %v1597_v22 = vpop.f32.mrb[13].mxu1 }
 0x252   : > { %1699 = vst.msk [vmem:[%s3048_s13 + $0x48] sm:$0xff] %vm614_vm1, %v1683_v56  ;;  %v1631_v54 = vmul.f32 %v3030_v45, %v1597_v22  ;;  %v1992_v20 = vpop.f32.mrb[14].mxu1 }
 0x253   : > { %v1656_v42 = vadd.f32 %v3035_v23, %v1633_v7  ;;  %v1634_v6 = vmul.f32 %v1992_v20, %v3030_v45  ;;  %v1600_v53 = vpop.f32.mrb[15].mxu1 }
 0x254   : > { %v1654_v36 = vadd.f32 %v3035_v23, %v1631_v54  ;;  %v1632_v44 = vmul.f32 %v3030_v45, %v1600_v53 }
 0x255   : > { %v1688_v35 = vadd.f32 %v1672_v25, %v1656_v42  ;;  %v1657_v58 = vadd.f32 %v3035_v23, %v1634_v6 }
 0x256   : > { %v1686_v17 = vadd.f32 %v1670_v16, %v1654_v36  ;;  %v1655_v48 = vadd.f32 %v3035_v23, %v1632_v44 }
 0x257   : > { %1704 = vst.msk [vmem:[%s3048_s13 + $0x70] sm:$0xff] %vm614_vm1, %v1688_v35  ;;  %v1689_v50 = vadd.f32 %v1673_v15, %v1657_v58 }
 0x258   : > { %1702 = vst.msk [vmem:[%s3048_s13 + $0x60] sm:$0xff] %vm614_vm1, %v1686_v17  ;;  %v1687_v47 = vadd.f32 %v1671_v24, %v1655_v48 }
 0x259   : > { %1705 = vst.msk [vmem:[%s3048_s13 + $0x78] sm:$0xff] %vm614_vm1, %v1689_v50 }
 0x25a   : > { %1703 = vst.msk [vmem:[%s3048_s13 + $0x68] sm:$0xff] %vm614_vm1, %v1687_v47 }
 0x25b PF: > { %s22_s25 = sadd.s32 1, %s2075_s25   ;;  %s3242_s22 = sld [smem:[#allocation3_spill]] }
 0x25c   : > { %p19_p10 = scmp.ge.s32.totalorder %s22_s25, 6   ;;  %s3243_s24 = sld [smem:[#allocation4_spill]] }
 0x25d   : > { %s3244_s27 = sld [smem:[#allocation5_spill]]  ;;  %s3245_s21 = smov %s2067_s23 }
 0x25e   :  { %21 = sbr.rel (!%p19_p10) target bundleno = 3 (0x3), region = 104 }
 0x262   : > { %s3246_s23 = smov %s3243_s24 }
 0x263   : > { %s3247_s24 = smov %s3244_s27 }

</bundles_post_ra>
